<compile_context>
chip_gen: v7x
topology: tpu7x:2x2x1
jax: 0.10.0
libtpu: 0.0.40
codegen_flags: <defaults>
</compile_context>

<pallas_src>
import numpy as np
import jax
import jax.numpy as jnp
from jax import lax
from jax.experimental import pallas as pl
from jax.experimental.pallas import tpu as pltpu

BN_EPS = 1e-5


# --------------------------- bilinear interp helpers -------------------------
def _interp_taps(out_size, in_size):
    """PyTorch bilinear (align_corners=False) source taps: (lo, hi, frac)."""
    scale = in_size / out_size
    lo, hi, fr = [], [], []
    for i in range(out_size):
        src = max((i + 0.5) * scale - 0.5, 0.0)
        a = min(int(np.floor(src)), in_size - 1)
        b = min(a + 1, in_size - 1)
        lo.append(a)
        hi.append(b)
        fr.append(float(src - a))
    return lo, hi, fr


def _interp_matrix(out_size, in_size):
    lo, hi, fr = _interp_taps(out_size, in_size)
    m = np.zeros((out_size, in_size), np.float32)
    for i in range(out_size):
        m[i, lo[i]] += 1.0 - fr[i]
        m[i, hi[i]] += fr[i]
    return m


# ----------------------------- Pallas kernel --------------------------------
def _make_lgag_kernel(B, F_g, F_l, F_int, Hg, Wg, Hx, Wx):
    Pg, Px = Hg * Wg, Hx * Wx

    def kernel(gpad_ref, xpad_ref, x_ref, wg_ref, wx_ref, bias_ref,
               upT_ref, sel_ref, bpsi_ref, o_ref):
        gpad = gpad_ref[0]                    # (B*F_g, (Hg+2)*Wg + 2)  bf16
        xpad = xpad_ref[0]                    # (B*F_l, (Hx+2)*Wx + 2)  bf16

        # In-kernel wrap masks (iota + compare); built once per grid step.
        def wrap_masks(width, npos):
            col = lax.broadcasted_iota(jnp.int32, (1, npos), 1) % width
            return col != 0, col != (width - 1)

        gml, gmr = wrap_masks(Wg, Pg)
        xml, xmr = wrap_masks(Wx, Px)

        def im2col(src, width, npos, mask_l, mask_r):
            # src: (C, (H+2)*W + 2) bf16 zero-padded flattened feature map.
            # Returns the (9*C, npos) tap stack; taps ordered (dx, dy, c) to
            # match the fused weight layout; wrap masks zero the taps that
            # wrapped across a row boundary of the flattened layout.
            taps = []
            for dx in range(3):
                for dy in range(3):
                    start = dy * width + dx
                    tap = src[:, start:start + npos]
                    if dx == 0:
                        tap = jnp.where(mask_l, tap, 0)
                    elif dx == 2:
                        tap = jnp.where(mask_r, tap, 0)
                    taps.append(tap)
            return jnp.concatenate(taps, axis=0)          # (9*C, npos)

        # Fused 3x3 convs: one (F_int, 9*C) @ (9*C, P) matmul per image per
        # branch, results stacked on (8-aligned) sublanes across the B images.
        g1_parts, x1_parts = [], []
        for b in range(B):
            gsl = gpad[b * F_g:(b + 1) * F_g, :]
            xsl = xpad[b * F_l:(b + 1) * F_l, :]
            g1_parts.append(jnp.dot(wg_ref[...], im2col(gsl, Wg, Pg, gml, gmr),
                                    preferred_element_type=jnp.float32))
            x1_parts.append(jnp.dot(wx_ref[...], im2col(xsl, Wx, Px, xml, xmr),
                                    preferred_element_type=jnp.float32))
        g1 = jnp.concatenate(g1_parts, axis=0)            # (B*F_int, Pg) f32
        x1 = jnp.concatenate(x1_parts, axis=0)            # (B*F_int, Px) f32

        # Dense bilinear upsample (align_corners=False) as ONE MXU matmul.
        g1_up = jnp.dot(g1.astype(jnp.bfloat16), upT_ref[...],
                        preferred_element_type=jnp.float32)   # (B*F_int, Px)

        # ReLU( upsample(W_g g) + W_x x + folded biases )   (f32 VPU path).
        act = jnp.maximum(g1_up + x1 + bias_ref[...], 0.0)    # (B*F_int, Px)

        # psi: 1x1 conv + BN + sigmoid fused with the per-batch broadcast to
        # the F_l gate rows via one tiny block-diagonal selector matmul.
        pre = jnp.dot(sel_ref[...], act.astype(jnp.bfloat16),
                      preferred_element_type=jnp.float32)     # (B*F_l, Px)
        psi = jax.nn.sigmoid(pre + bpsi_ref[0, 0])

        # Gate the lane-aligned f32 skip features and store (unmasked vst).
        o_ref[0] = x_ref[0] * psi

    return kernel


# ------------------------------- glue ---------------------------------------
def _pick_batch_block(n, per_image_bytes, budget_bytes=4 << 20, max_b=8):
    """Largest divisor of n (<= max_b) whose per-step footprint fits budget."""
    best = 1
    for b in range(1, min(n, max_b) + 1):
        if n % b == 0 and b * per_image_bytes <= budget_bytes:
            best = b
    return best


def _vmem_limit_bytes(block_bytes, intermediate_bytes):
    # Sized from the actual per-step footprint (double-buffered blocks +
    # in-kernel intermediates + headroom), capped by the generation's VMEM.
    try:
        cap = pltpu.get_tpu_info().vmem_capacity_bytes
    except Exception:
        cap = 64 * 1024 * 1024
    need = 2 * block_bytes + 2 * intermediate_bytes + (4 << 20)
    return int(min(max(need, 8 << 20), cap * 3 // 4))


def lgag_forward(g_nchw, x_nchw, w_g, b_g, w_x, b_x, w_psi, b_psi):
    n, f_g, hg, wg = g_nchw.shape
    _, f_l, hx, wx = x_nchw.shape
    f_int = w_g.shape[0]
    s = np.float32(1.0 / np.sqrt(1.0 + BN_EPS))     # folded inference BatchNorm

    pg, px = hg * wg, hx * wx
    pg_pad = (hg + 2) * wg + 2
    px_pad = (hx + 2) * wx + 2

    # Pick how many images to process per grid step.
    per_img = ((f_g * pg_pad + f_l * px_pad) * 2          # padded bf16 slabs
               + 2 * f_l * px * 4                          # gating input + output
               + 9 * (f_g * pg + f_l * px) * 2             # im2col stacks
               + f_int * (pg + 3 * px) * 4)                # conv/upsample/act slabs
    B = _pick_batch_block(n, per_img)
    gsteps = n // B

    def pad_flat(t, h, w):
        # (N, C, H, W) -> (N, C, (H+2)*W + 2): zero rows above/below plus one
        # zero element at each end of the flattened slab (dx = +/-1 halo).
        t = jnp.pad(t, ((0, 0), (0, 0), (1, 1), (0, 0)))
        t = t.reshape(t.shape[0], t.shape[1], (h + 2) * w)
        return jnp.pad(t, ((0, 0), (0, 0), (1, 1)))

    gpad = pad_flat(g_nchw, hg, wg).astype(jnp.bfloat16).reshape(
        gsteps, B * f_g, pg_pad)                           # conv-only -> bf16
    xpad = pad_flat(x_nchw, hx, wx).astype(jnp.bfloat16).reshape(
        gsteps, B * f_l, px_pad)                           # conv-only -> bf16
    xflat = x_nchw.astype(jnp.float32).reshape(gsteps, B * f_l, px)  # gating, f32

    # Fused conv weights: flat tap index = (dx*3 + dy)*C_in + c, BN scale folded.
    def fuse_w(w, c_in):
        wt = jnp.transpose(w, (3, 2, 1, 0)).reshape(9 * c_in, f_int)
        return (wt.T * s).astype(jnp.bfloat16)             # (F_int, 9*C_in)

    wg_flat = fuse_w(w_g, f_g)
    wx_flat = fuse_w(w_x, f_l)

    # Per-channel conv biases commute with the (convex) bilinear upsample, so
    # they are added once after the upsample; replicated per in-step image.
    bias_rep = jnp.tile(((b_g + b_x) * s).reshape(f_int, 1),
                        (B, 1)).astype(jnp.float32)        # (B*F_int, 1)

    # Dense bilinear upsample operand: g1_up = g1 @ kron(Lh, Lw)^T.
    upT = jnp.asarray(np.kron(_interp_matrix(hx, hg), _interp_matrix(wx, wg)).T,
                      jnp.bfloat16)                        # (Pg, Px)

    # psi selector: block-diagonal (B*F_l, B*F_int); row b*F_l+j holds the
    # BN-scaled psi 1x1-conv weights of in-step image b, so one matmul performs
    # the channel reduction AND the broadcast to the F_l gate rows.
    sel = jnp.kron(jnp.eye(B, dtype=jnp.float32),
                   jnp.ones((f_l, 1), jnp.float32) @ (w_psi.reshape(1, f_int) * s))
    sel = sel.astype(jnp.bfloat16)                         # (B*F_l, B*F_int)

    bpsi = (b_psi * s).reshape(1, 1).astype(jnp.float32)   # SMEM scalar

    kernel = _make_lgag_kernel(B, f_g, f_l, f_int, hg, wg, hx, wx)

    block_bytes = (B * f_g * pg_pad * 2 + B * f_l * px_pad * 2
                   + 2 * B * f_l * px * 4
                   + f_int * 9 * (f_g + f_l) * 2 + B * f_int * 4
                   + pg * px * 2 + (B * f_l) * (B * f_int) * 2)
    interm_bytes = (B * 9 * (f_g * pg + f_l * px) * 2
                    + B * f_int * (pg + 3 * px) * 4
                    + 2 * B * f_l * px * 4)

    out_flat = pl.pallas_call(
        kernel,
        out_shape=jax.ShapeDtypeStruct((gsteps, B * f_l, px), jnp.float32),
        grid=(gsteps,),
        in_specs=[
            pl.BlockSpec((1, B * f_g, pg_pad), lambda i: (i, 0, 0)),   # gpad
            pl.BlockSpec((1, B * f_l, px_pad), lambda i: (i, 0, 0)),   # xpad (conv)
            pl.BlockSpec((1, B * f_l, px), lambda i: (i, 0, 0)),       # x (gating)
            pl.BlockSpec((f_int, 9 * f_g), lambda i: (0, 0)),          # fused W_g
            pl.BlockSpec((f_int, 9 * f_l), lambda i: (0, 0)),          # fused W_x
            pl.BlockSpec((B * f_int, 1), lambda i: (0, 0)),            # folded bias
            pl.BlockSpec((pg, px), lambda i: (0, 0)),                  # upsample^T
            pl.BlockSpec((B * f_l, B * f_int), lambda i: (0, 0)),      # psi selector
            pl.BlockSpec(memory_space=pltpu.MemorySpace.SMEM),         # psi bias
        ],
        out_specs=pl.BlockSpec((1, B * f_l, px), lambda i: (i, 0, 0)),
        compiler_params=pltpu.CompilerParams(
            dimension_semantics=("parallel",),
            vmem_limit_bytes=_vmem_limit_bytes(block_bytes, interm_bytes)),
    )(gpad, xpad, xflat, wg_flat, wx_flat, bias_rep, upT, sel, bpsi)

    # Lane-dense (B*F_l, Hx*Wx) slabs reshape directly to NCHW.
    return out_flat.reshape(n, f_l, hx, wx)


# -------------------------- pure-JAX reference -------------------------------
def lgag_reference(g_nchw, x_nchw, w_g, b_g, w_x, b_x, w_psi, b_psi):
    g = jnp.transpose(g_nchw, (0, 2, 3, 1))
    x = jnp.transpose(x_nchw, (0, 2, 3, 1))
    s = np.float32(1.0 / np.sqrt(1.0 + BN_EPS))

    def conv3x3(inp, w, b):
        out = lax.conv_general_dilated(
            inp, jnp.transpose(w, (2, 3, 1, 0)),
            window_strides=(1, 1), padding="SAME",
            dimension_numbers=("NHWC", "HWIO", "NHWC"),
            precision=lax.Precision.HIGHEST)
        return out + b

    g1 = conv3x3(g, w_g, b_g) * s
    x1 = conv3x3(x, w_x, b_x) * s
    lh = jnp.asarray(_interp_matrix(x.shape[1], g.shape[1]))
    lw = jnp.asarray(_interp_matrix(x.shape[2], g.shape[2]))
    g1_up = jnp.einsum("ah,nhwc->nawc", lh, g1)
    g1_up = jnp.einsum("bw,nawc->nabc", lw, g1_up)
    a = jnp.maximum(g1_up + x1, 0.0)
    psi = jax.nn.sigmoid(
        jnp.einsum("nhwc,c->nhw", a, w_psi.reshape(-1)) * s + b_psi[0] * s)
    out = x * psi[..., None]
    return jnp.transpose(out, (0, 3, 1, 2))


# --------------------------------- main --------------------------------------
if __name__ == "__main__":
    key = jax.random.PRNGKey(0)
    N, F_g, F_l, F_int = 2, 4, 4, 8
    Hg = Wg = 8       # gating-signal resolution
    Hx = Wx = 16      # skip-connection resolution

    ks = jax.random.split(key, 5)
    g_nchw = jax.random.normal(ks[0], (N, F_g, Hg, Wg), jnp.float32)
    x_nchw = jax.random.normal(ks[1], (N, F_l, Hx, Wx), jnp.float32)

    # "normal" init scheme: conv weights ~ N(0, 0.02), conv biases = 0,
    # BN gamma = 1, beta = 0 (inference-mode stats folded in lgag_forward).
    w_g = 0.02 * jax.random.normal(ks[2], (F_int, F_g, 3, 3), jnp.float32)
    b_g = jnp.zeros((F_int,), jnp.float32)
    w_x = 0.02 * jax.random.normal(ks[3], (F_int, F_l, 3, 3), jnp.float32)
    b_x = jnp.zeros((F_int,), jnp.float32)
    w_psi = 0.02 * jax.random.normal(ks[4], (1, F_int, 1, 1), jnp.float32)
    b_psi = jnp.zeros((1,), jnp.float32)

    out = lgag_forward(g_nchw, x_nchw, w_g, b_g, w_x, b_x, w_psi, b_psi)
    out = jax.block_until_ready(out)

    ref = lgag_reference(g_nchw, x_nchw, w_g, b_g, w_x, b_x, w_psi, b_psi)
    # Tolerance loosened slightly (2e-3) for the bf16 MXU inputs.
    np.testing.assert_allclose(np.asarray(out), np.asarray(ref),
                               rtol=2e-3, atol=2e-3)
    print("KERNEL_OK")
</pallas_src>

<mosaic_0001>
module attributes {stable_mosaic.version = 11 : i64} {
  func.func @kernel(%arg0: i32, %arg1: memref<1x8x82xbf16, #tpu.memory_space<vmem>>, %arg2: memref<1x8x290xbf16, #tpu.memory_space<vmem>>, %arg3: memref<1x8x256xf32, #tpu.memory_space<vmem>>, %arg4: memref<8x36xbf16, #tpu.memory_space<vmem>>, %arg5: memref<8x36xbf16, #tpu.memory_space<vmem>>, %arg6: memref<16x1xf32, #tpu.memory_space<vmem>>, %arg7: memref<64x256xbf16, #tpu.memory_space<vmem>>, %arg8: memref<8x16xbf16, #tpu.memory_space<vmem>>, %arg9: memref<1x1xf32, #tpu.memory_space<smem>>, %arg10: memref<1x8x256xf32, #tpu.memory_space<vmem>>) attributes {dimension_semantics = [#tpu.dimension_semantics<parallel>], iteration_bounds = array<i64: 1>, scalar_prefetch = 0 : i64, scratch_operands = 0 : i64, tpu.core_type = #tpu.core_type<tc>, window_params = [{transform_indices = @transform_0, window_bounds = array<i64: 1, 8, 82>}, {transform_indices = @transform_1, window_bounds = array<i64: 1, 8, 290>}, {transform_indices = @transform_2, window_bounds = array<i64: 1, 8, 256>}, {pipeline_mode = #tpu.pipeline_mode<synchronous>, transform_indices = @transform_3, window_bounds = array<i64: 8, 36>}, {pipeline_mode = #tpu.pipeline_mode<synchronous>, transform_indices = @transform_4, window_bounds = array<i64: 8, 36>}, {pipeline_mode = #tpu.pipeline_mode<synchronous>, transform_indices = @transform_5, window_bounds = array<i64: 16, 1>}, {pipeline_mode = #tpu.pipeline_mode<synchronous>, transform_indices = @transform_6, window_bounds = array<i64: 64, 256>}, {pipeline_mode = #tpu.pipeline_mode<synchronous>, transform_indices = @transform_7, window_bounds = array<i64: 8, 16>}, {transform_indices = @transform_8, window_bounds = array<i64: 1, 1>}, {transform_indices = @transform_9, window_bounds = array<i64: 1, 8, 256>}]} {
    %c0 = arith.constant 0 : index
    %c0_0 = arith.constant 0 : index
    %c0_1 = arith.constant 0 : index
    %0 = vector.load %arg1[%c0, %c0_0, %c0_1] : memref<1x8x82xbf16, #tpu.memory_space<vmem>>, vector<1x8x82xbf16>
    %1 = vector.shape_cast %0 : vector<1x8x82xbf16> to vector<8x82xbf16>
    %c0_2 = arith.constant 0 : index
    %c0_3 = arith.constant 0 : index
    %c0_4 = arith.constant 0 : index
    %2 = vector.load %arg2[%c0_2, %c0_3, %c0_4] : memref<1x8x290xbf16, #tpu.memory_space<vmem>>, vector<1x8x290xbf16>
    %3 = vector.shape_cast %2 : vector<1x8x290xbf16> to vector<8x290xbf16>
    %4 = tpu.iota {dimensions = array<i32: 1>} : vector<1x64xi32>
    %c8_i32 = arith.constant 8 : i32
    %c0_i32 = arith.constant 0 : i32
    %5 = arith.cmpi eq, %c8_i32, %c0_i32 : i32
    %c1_i32 = arith.constant 1 : i32
    %6 = arith.select %5, %c1_i32, %c8_i32 : i32
    %7 = vector.broadcast %6 : i32 to vector<1x64xi32>
    %8 = arith.remsi %4, %7 : vector<1x64xi32>
    %c0_i32_5 = arith.constant 0 : i32
    %9 = vector.broadcast %c0_i32_5 : i32 to vector<1x64xi32>
    %10 = arith.cmpi ne, %8, %9 : vector<1x64xi32>
    %c0_i32_6 = arith.constant 0 : i32
    %11 = vector.broadcast %c0_i32_6 : i32 to vector<1x64xi32>
    %12 = arith.cmpi slt, %8, %11 : vector<1x64xi32>
    %c0_i32_7 = arith.constant 0 : i32
    %13 = arith.cmpi slt, %6, %c0_i32_7 : i32
    %14 = vector.broadcast %13 : i1 to vector<1x64xi1>
    %15 = vector.broadcast %14 : vector<1x64xi1> to vector<1x64xi1>
    %16 = arith.xori %12, %15 : vector<1x64xi1>
    %17 = arith.andi %16, %10 : vector<1x64xi1>
    %18 = vector.broadcast %6 : i32 to vector<1x64xi32>
    %19 = arith.addi %8, %18 : vector<1x64xi32>
    %20 = arith.select %17, %19, %8 : vector<1x64xi1>, vector<1x64xi32>
    %c0_i32_8 = arith.constant 0 : i32
    %21 = vector.broadcast %c0_i32_8 : i32 to vector<1x64xi32>
    %22 = arith.cmpi ne, %20, %21 : vector<1x64xi32>
    %c7_i32 = arith.constant 7 : i32
    %23 = vector.broadcast %c7_i32 : i32 to vector<1x64xi32>
    %24 = arith.cmpi ne, %20, %23 : vector<1x64xi32>
    %25 = tpu.iota {dimensions = array<i32: 1>} : vector<1x256xi32>
    %c16_i32 = arith.constant 16 : i32
    %c0_i32_9 = arith.constant 0 : i32
    %26 = arith.cmpi eq, %c16_i32, %c0_i32_9 : i32
    %c1_i32_10 = arith.constant 1 : i32
    %27 = arith.select %26, %c1_i32_10, %c16_i32 : i32
    %28 = vector.broadcast %27 : i32 to vector<1x256xi32>
    %29 = arith.remsi %25, %28 : vector<1x256xi32>
    %c0_i32_11 = arith.constant 0 : i32
    %30 = vector.broadcast %c0_i32_11 : i32 to vector<1x256xi32>
    %31 = arith.cmpi ne, %29, %30 : vector<1x256xi32>
    %c0_i32_12 = arith.constant 0 : i32
    %32 = vector.broadcast %c0_i32_12 : i32 to vector<1x256xi32>
    %33 = arith.cmpi slt, %29, %32 : vector<1x256xi32>
    %c0_i32_13 = arith.constant 0 : i32
    %34 = arith.cmpi slt, %27, %c0_i32_13 : i32
    %35 = vector.broadcast %34 : i1 to vector<1x256xi1>
    %36 = vector.broadcast %35 : vector<1x256xi1> to vector<1x256xi1>
    %37 = arith.xori %33, %36 : vector<1x256xi1>
    %38 = arith.andi %37, %31 : vector<1x256xi1>
    %39 = vector.broadcast %27 : i32 to vector<1x256xi32>
    %40 = arith.addi %29, %39 : vector<1x256xi32>
    %41 = arith.select %38, %40, %29 : vector<1x256xi1>, vector<1x256xi32>
    %c0_i32_14 = arith.constant 0 : i32
    %42 = vector.broadcast %c0_i32_14 : i32 to vector<1x256xi32>
    %43 = arith.cmpi ne, %41, %42 : vector<1x256xi32>
    %c15_i32 = arith.constant 15 : i32
    %44 = vector.broadcast %c15_i32 : i32 to vector<1x256xi32>
    %45 = arith.cmpi ne, %41, %44 : vector<1x256xi32>
    %46 = vector.extract_strided_slice %1 {offsets = [0, 0], sizes = [4, 82], strides = [1, 1]} : vector<8x82xbf16> to vector<4x82xbf16>
    %47 = vector.extract_strided_slice %3 {offsets = [0, 0], sizes = [4, 290], strides = [1, 1]} : vector<8x290xbf16> to vector<4x290xbf16>
    %c0_15 = arith.constant 0 : index
    %c0_16 = arith.constant 0 : index
    %48 = vector.load %arg4[%c0_15, %c0_16] : memref<8x36xbf16, #tpu.memory_space<vmem>>, vector<8x36xbf16>
    %49 = vector.extract_strided_slice %46 {offsets = [0, 0], sizes = [4, 64], strides = [1, 1]} : vector<4x82xbf16> to vector<4x64xbf16>
    %c0_i32_17 = arith.constant 0 : i32
    %50 = arith.sitofp %c0_i32_17 : i32 to bf16
    %51 = vector.shape_cast %22 : vector<1x64xi1> to vector<1x64xi1>
    %52 = vector.broadcast %51 : vector<1x64xi1> to vector<4x64xi1>
    %53 = vector.broadcast %50 : bf16 to vector<4x64xbf16>
    %54 = arith.select %52, %49, %53 : vector<4x64xi1>, vector<4x64xbf16>
    %55 = vector.extract_strided_slice %46 {offsets = [0, 8], sizes = [4, 64], strides = [1, 1]} : vector<4x82xbf16> to vector<4x64xbf16>
    %c0_i32_18 = arith.constant 0 : i32
    %56 = arith.sitofp %c0_i32_18 : i32 to bf16
    %57 = vector.shape_cast %22 : vector<1x64xi1> to vector<1x64xi1>
    %58 = vector.broadcast %57 : vector<1x64xi1> to vector<4x64xi1>
    %59 = vector.broadcast %56 : bf16 to vector<4x64xbf16>
    %60 = arith.select %58, %55, %59 : vector<4x64xi1>, vector<4x64xbf16>
    %61 = vector.extract_strided_slice %46 {offsets = [0, 16], sizes = [4, 64], strides = [1, 1]} : vector<4x82xbf16> to vector<4x64xbf16>
    %c0_i32_19 = arith.constant 0 : i32
    %62 = arith.sitofp %c0_i32_19 : i32 to bf16
    %63 = vector.shape_cast %22 : vector<1x64xi1> to vector<1x64xi1>
    %64 = vector.broadcast %63 : vector<1x64xi1> to vector<4x64xi1>
    %65 = vector.broadcast %62 : bf16 to vector<4x64xbf16>
    %66 = arith.select %64, %61, %65 : vector<4x64xi1>, vector<4x64xbf16>
    %67 = vector.extract_strided_slice %46 {offsets = [0, 1], sizes = [4, 64], strides = [1, 1]} : vector<4x82xbf16> to vector<4x64xbf16>
    %68 = vector.extract_strided_slice %46 {offsets = [0, 9], sizes = [4, 64], strides = [1, 1]} : vector<4x82xbf16> to vector<4x64xbf16>
    %69 = vector.extract_strided_slice %46 {offsets = [0, 17], sizes = [4, 64], strides = [1, 1]} : vector<4x82xbf16> to vector<4x64xbf16>
    %70 = vector.extract_strided_slice %46 {offsets = [0, 2], sizes = [4, 64], strides = [1, 1]} : vector<4x82xbf16> to vector<4x64xbf16>
    %c0_i32_20 = arith.constant 0 : i32
    %71 = arith.sitofp %c0_i32_20 : i32 to bf16
    %72 = vector.shape_cast %24 : vector<1x64xi1> to vector<1x64xi1>
    %73 = vector.broadcast %72 : vector<1x64xi1> to vector<4x64xi1>
    %74 = vector.broadcast %71 : bf16 to vector<4x64xbf16>
    %75 = arith.select %73, %70, %74 : vector<4x64xi1>, vector<4x64xbf16>
    %76 = vector.extract_strided_slice %46 {offsets = [0, 10], sizes = [4, 64], strides = [1, 1]} : vector<4x82xbf16> to vector<4x64xbf16>
    %c0_i32_21 = arith.constant 0 : i32
    %77 = arith.sitofp %c0_i32_21 : i32 to bf16
    %78 = vector.shape_cast %24 : vector<1x64xi1> to vector<1x64xi1>
    %79 = vector.broadcast %78 : vector<1x64xi1> to vector<4x64xi1>
    %80 = vector.broadcast %77 : bf16 to vector<4x64xbf16>
    %81 = arith.select %79, %76, %80 : vector<4x64xi1>, vector<4x64xbf16>
    %82 = vector.extract_strided_slice %46 {offsets = [0, 18], sizes = [4, 64], strides = [1, 1]} : vector<4x82xbf16> to vector<4x64xbf16>
    %c0_i32_22 = arith.constant 0 : i32
    %83 = arith.sitofp %c0_i32_22 : i32 to bf16
    %84 = vector.shape_cast %24 : vector<1x64xi1> to vector<1x64xi1>
    %85 = vector.broadcast %84 : vector<1x64xi1> to vector<4x64xi1>
    %86 = vector.broadcast %83 : bf16 to vector<4x64xbf16>
    %87 = arith.select %85, %82, %86 : vector<4x64xi1>, vector<4x64xbf16>
    %88 = tpu.concatenate %54, %60, %66, %67, %68, %69, %75, %81, %87 in 0 : vector<4x64xbf16>, vector<4x64xbf16>, vector<4x64xbf16>, vector<4x64xbf16>, vector<4x64xbf16>, vector<4x64xbf16>, vector<4x64xbf16>, vector<4x64xbf16>, vector<4x64xbf16> -> vector<36x64xbf16>
    %cst = arith.constant dense<0.000000e+00> : vector<8x64xf32>
    %89 = tpu.matmul %48, %88, %cst {dimension_numbers = #tpu.dot_dimension_numbers<[1], [0], [0], [1], [0, 0, 1, 1], [], []>} : vector<8x36xbf16>, vector<36x64xbf16>, vector<8x64xf32> -> vector<8x64xf32>
    %c0_23 = arith.constant 0 : index
    %c0_24 = arith.constant 0 : index
    %90 = vector.load %arg5[%c0_23, %c0_24] : memref<8x36xbf16, #tpu.memory_space<vmem>>, vector<8x36xbf16>
    %91 = vector.extract_strided_slice %47 {offsets = [0, 0], sizes = [4, 256], strides = [1, 1]} : vector<4x290xbf16> to vector<4x256xbf16>
    %c0_i32_25 = arith.constant 0 : i32
    %92 = arith.sitofp %c0_i32_25 : i32 to bf16
    %93 = vector.shape_cast %43 : vector<1x256xi1> to vector<1x256xi1>
    %94 = vector.broadcast %93 : vector<1x256xi1> to vector<4x256xi1>
    %95 = vector.broadcast %92 : bf16 to vector<4x256xbf16>
    %96 = arith.select %94, %91, %95 : vector<4x256xi1>, vector<4x256xbf16>
    %97 = vector.extract_strided_slice %47 {offsets = [0, 16], sizes = [4, 256], strides = [1, 1]} : vector<4x290xbf16> to vector<4x256xbf16>
    %c0_i32_26 = arith.constant 0 : i32
    %98 = arith.sitofp %c0_i32_26 : i32 to bf16
    %99 = vector.shape_cast %43 : vector<1x256xi1> to vector<1x256xi1>
    %100 = vector.broadcast %99 : vector<1x256xi1> to vector<4x256xi1>
    %101 = vector.broadcast %98 : bf16 to vector<4x256xbf16>
    %102 = arith.select %100, %97, %101 : vector<4x256xi1>, vector<4x256xbf16>
    %103 = vector.extract_strided_slice %47 {offsets = [0, 32], sizes = [4, 256], strides = [1, 1]} : vector<4x290xbf16> to vector<4x256xbf16>
    %c0_i32_27 = arith.constant 0 : i32
    %104 = arith.sitofp %c0_i32_27 : i32 to bf16
    %105 = vector.shape_cast %43 : vector<1x256xi1> to vector<1x256xi1>
    %106 = vector.broadcast %105 : vector<1x256xi1> to vector<4x256xi1>
    %107 = vector.broadcast %104 : bf16 to vector<4x256xbf16>
    %108 = arith.select %106, %103, %107 : vector<4x256xi1>, vector<4x256xbf16>
    %109 = vector.extract_strided_slice %47 {offsets = [0, 1], sizes = [4, 256], strides = [1, 1]} : vector<4x290xbf16> to vector<4x256xbf16>
    %110 = vector.extract_strided_slice %47 {offsets = [0, 17], sizes = [4, 256], strides = [1, 1]} : vector<4x290xbf16> to vector<4x256xbf16>
    %111 = vector.extract_strided_slice %47 {offsets = [0, 33], sizes = [4, 256], strides = [1, 1]} : vector<4x290xbf16> to vector<4x256xbf16>
    %112 = vector.extract_strided_slice %47 {offsets = [0, 2], sizes = [4, 256], strides = [1, 1]} : vector<4x290xbf16> to vector<4x256xbf16>
    %c0_i32_28 = arith.constant 0 : i32
    %113 = arith.sitofp %c0_i32_28 : i32 to bf16
    %114 = vector.shape_cast %45 : vector<1x256xi1> to vector<1x256xi1>
    %115 = vector.broadcast %114 : vector<1x256xi1> to vector<4x256xi1>
    %116 = vector.broadcast %113 : bf16 to vector<4x256xbf16>
    %117 = arith.select %115, %112, %116 : vector<4x256xi1>, vector<4x256xbf16>
    %118 = vector.extract_strided_slice %47 {offsets = [0, 18], sizes = [4, 256], strides = [1, 1]} : vector<4x290xbf16> to vector<4x256xbf16>
    %c0_i32_29 = arith.constant 0 : i32
    %119 = arith.sitofp %c0_i32_29 : i32 to bf16
    %120 = vector.shape_cast %45 : vector<1x256xi1> to vector<1x256xi1>
    %121 = vector.broadcast %120 : vector<1x256xi1> to vector<4x256xi1>
    %122 = vector.broadcast %119 : bf16 to vector<4x256xbf16>
    %123 = arith.select %121, %118, %122 : vector<4x256xi1>, vector<4x256xbf16>
    %124 = vector.extract_strided_slice %47 {offsets = [0, 34], sizes = [4, 256], strides = [1, 1]} : vector<4x290xbf16> to vector<4x256xbf16>
    %c0_i32_30 = arith.constant 0 : i32
    %125 = arith.sitofp %c0_i32_30 : i32 to bf16
    %126 = vector.shape_cast %45 : vector<1x256xi1> to vector<1x256xi1>
    %127 = vector.broadcast %126 : vector<1x256xi1> to vector<4x256xi1>
    %128 = vector.broadcast %125 : bf16 to vector<4x256xbf16>
    %129 = arith.select %127, %124, %128 : vector<4x256xi1>, vector<4x256xbf16>
    %130 = tpu.concatenate %96, %102, %108, %109, %110, %111, %117, %123, %129 in 0 : vector<4x256xbf16>, vector<4x256xbf16>, vector<4x256xbf16>, vector<4x256xbf16>, vector<4x256xbf16>, vector<4x256xbf16>, vector<4x256xbf16>, vector<4x256xbf16>, vector<4x256xbf16> -> vector<36x256xbf16>
    %cst_31 = arith.constant dense<0.000000e+00> : vector<8x256xf32>
    %131 = tpu.matmul %90, %130, %cst_31 {dimension_numbers = #tpu.dot_dimension_numbers<[1], [0], [0], [1], [0, 0, 1, 1], [], []>} : vector<8x36xbf16>, vector<36x256xbf16>, vector<8x256xf32> -> vector<8x256xf32>
    %132 = vector.extract_strided_slice %1 {offsets = [4, 0], sizes = [4, 82], strides = [1, 1]} : vector<8x82xbf16> to vector<4x82xbf16>
    %133 = vector.extract_strided_slice %3 {offsets = [4, 0], sizes = [4, 290], strides = [1, 1]} : vector<8x290xbf16> to vector<4x290xbf16>
    %c0_32 = arith.constant 0 : index
    %c0_33 = arith.constant 0 : index
    %134 = vector.load %arg4[%c0_32, %c0_33] : memref<8x36xbf16, #tpu.memory_space<vmem>>, vector<8x36xbf16>
    %135 = vector.extract_strided_slice %132 {offsets = [0, 0], sizes = [4, 64], strides = [1, 1]} : vector<4x82xbf16> to vector<4x64xbf16>
    %c0_i32_34 = arith.constant 0 : i32
    %136 = arith.sitofp %c0_i32_34 : i32 to bf16
    %137 = vector.shape_cast %22 : vector<1x64xi1> to vector<1x64xi1>
    %138 = vector.broadcast %137 : vector<1x64xi1> to vector<4x64xi1>
    %139 = vector.broadcast %136 : bf16 to vector<4x64xbf16>
    %140 = arith.select %138, %135, %139 : vector<4x64xi1>, vector<4x64xbf16>
    %141 = vector.extract_strided_slice %132 {offsets = [0, 8], sizes = [4, 64], strides = [1, 1]} : vector<4x82xbf16> to vector<4x64xbf16>
    %c0_i32_35 = arith.constant 0 : i32
    %142 = arith.sitofp %c0_i32_35 : i32 to bf16
    %143 = vector.shape_cast %22 : vector<1x64xi1> to vector<1x64xi1>
    %144 = vector.broadcast %143 : vector<1x64xi1> to vector<4x64xi1>
    %145 = vector.broadcast %142 : bf16 to vector<4x64xbf16>
    %146 = arith.select %144, %141, %145 : vector<4x64xi1>, vector<4x64xbf16>
    %147 = vector.extract_strided_slice %132 {offsets = [0, 16], sizes = [4, 64], strides = [1, 1]} : vector<4x82xbf16> to vector<4x64xbf16>
    %c0_i32_36 = arith.constant 0 : i32
    %148 = arith.sitofp %c0_i32_36 : i32 to bf16
    %149 = vector.shape_cast %22 : vector<1x64xi1> to vector<1x64xi1>
    %150 = vector.broadcast %149 : vector<1x64xi1> to vector<4x64xi1>
    %151 = vector.broadcast %148 : bf16 to vector<4x64xbf16>
    %152 = arith.select %150, %147, %151 : vector<4x64xi1>, vector<4x64xbf16>
    %153 = vector.extract_strided_slice %132 {offsets = [0, 1], sizes = [4, 64], strides = [1, 1]} : vector<4x82xbf16> to vector<4x64xbf16>
    %154 = vector.extract_strided_slice %132 {offsets = [0, 9], sizes = [4, 64], strides = [1, 1]} : vector<4x82xbf16> to vector<4x64xbf16>
    %155 = vector.extract_strided_slice %132 {offsets = [0, 17], sizes = [4, 64], strides = [1, 1]} : vector<4x82xbf16> to vector<4x64xbf16>
    %156 = vector.extract_strided_slice %132 {offsets = [0, 2], sizes = [4, 64], strides = [1, 1]} : vector<4x82xbf16> to vector<4x64xbf16>
    %c0_i32_37 = arith.constant 0 : i32
    %157 = arith.sitofp %c0_i32_37 : i32 to bf16
    %158 = vector.shape_cast %24 : vector<1x64xi1> to vector<1x64xi1>
    %159 = vector.broadcast %158 : vector<1x64xi1> to vector<4x64xi1>
    %160 = vector.broadcast %157 : bf16 to vector<4x64xbf16>
    %161 = arith.select %159, %156, %160 : vector<4x64xi1>, vector<4x64xbf16>
    %162 = vector.extract_strided_slice %132 {offsets = [0, 10], sizes = [4, 64], strides = [1, 1]} : vector<4x82xbf16> to vector<4x64xbf16>
    %c0_i32_38 = arith.constant 0 : i32
    %163 = arith.sitofp %c0_i32_38 : i32 to bf16
    %164 = vector.shape_cast %24 : vector<1x64xi1> to vector<1x64xi1>
    %165 = vector.broadcast %164 : vector<1x64xi1> to vector<4x64xi1>
    %166 = vector.broadcast %163 : bf16 to vector<4x64xbf16>
    %167 = arith.select %165, %162, %166 : vector<4x64xi1>, vector<4x64xbf16>
    %168 = vector.extract_strided_slice %132 {offsets = [0, 18], sizes = [4, 64], strides = [1, 1]} : vector<4x82xbf16> to vector<4x64xbf16>
    %c0_i32_39 = arith.constant 0 : i32
    %169 = arith.sitofp %c0_i32_39 : i32 to bf16
    %170 = vector.shape_cast %24 : vector<1x64xi1> to vector<1x64xi1>
    %171 = vector.broadcast %170 : vector<1x64xi1> to vector<4x64xi1>
    %172 = vector.broadcast %169 : bf16 to vector<4x64xbf16>
    %173 = arith.select %171, %168, %172 : vector<4x64xi1>, vector<4x64xbf16>
    %174 = tpu.concatenate %140, %146, %152, %153, %154, %155, %161, %167, %173 in 0 : vector<4x64xbf16>, vector<4x64xbf16>, vector<4x64xbf16>, vector<4x64xbf16>, vector<4x64xbf16>, vector<4x64xbf16>, vector<4x64xbf16>, vector<4x64xbf16>, vector<4x64xbf16> -> vector<36x64xbf16>
    %cst_40 = arith.constant dense<0.000000e+00> : vector<8x64xf32>
    %175 = tpu.matmul %134, %174, %cst_40 {dimension_numbers = #tpu.dot_dimension_numbers<[1], [0], [0], [1], [0, 0, 1, 1], [], []>} : vector<8x36xbf16>, vector<36x64xbf16>, vector<8x64xf32> -> vector<8x64xf32>
    %c0_41 = arith.constant 0 : index
    %c0_42 = arith.constant 0 : index
    %176 = vector.load %arg5[%c0_41, %c0_42] : memref<8x36xbf16, #tpu.memory_space<vmem>>, vector<8x36xbf16>
    %177 = vector.extract_strided_slice %133 {offsets = [0, 0], sizes = [4, 256], strides = [1, 1]} : vector<4x290xbf16> to vector<4x256xbf16>
    %c0_i32_43 = arith.constant 0 : i32
    %178 = arith.sitofp %c0_i32_43 : i32 to bf16
    %179 = vector.shape_cast %43 : vector<1x256xi1> to vector<1x256xi1>
    %180 = vector.broadcast %179 : vector<1x256xi1> to vector<4x256xi1>
    %181 = vector.broadcast %178 : bf16 to vector<4x256xbf16>
    %182 = arith.select %180, %177, %181 : vector<4x256xi1>, vector<4x256xbf16>
    %183 = vector.extract_strided_slice %133 {offsets = [0, 16], sizes = [4, 256], strides = [1, 1]} : vector<4x290xbf16> to vector<4x256xbf16>
    %c0_i32_44 = arith.constant 0 : i32
    %184 = arith.sitofp %c0_i32_44 : i32 to bf16
    %185 = vector.shape_cast %43 : vector<1x256xi1> to vector<1x256xi1>
    %186 = vector.broadcast %185 : vector<1x256xi1> to vector<4x256xi1>
    %187 = vector.broadcast %184 : bf16 to vector<4x256xbf16>
    %188 = arith.select %186, %183, %187 : vector<4x256xi1>, vector<4x256xbf16>
    %189 = vector.extract_strided_slice %133 {offsets = [0, 32], sizes = [4, 256], strides = [1, 1]} : vector<4x290xbf16> to vector<4x256xbf16>
    %c0_i32_45 = arith.constant 0 : i32
    %190 = arith.sitofp %c0_i32_45 : i32 to bf16
    %191 = vector.shape_cast %43 : vector<1x256xi1> to vector<1x256xi1>
    %192 = vector.broadcast %191 : vector<1x256xi1> to vector<4x256xi1>
    %193 = vector.broadcast %190 : bf16 to vector<4x256xbf16>
    %194 = arith.select %192, %189, %193 : vector<4x256xi1>, vector<4x256xbf16>
    %195 = vector.extract_strided_slice %133 {offsets = [0, 1], sizes = [4, 256], strides = [1, 1]} : vector<4x290xbf16> to vector<4x256xbf16>
    %196 = vector.extract_strided_slice %133 {offsets = [0, 17], sizes = [4, 256], strides = [1, 1]} : vector<4x290xbf16> to vector<4x256xbf16>
    %197 = vector.extract_strided_slice %133 {offsets = [0, 33], sizes = [4, 256], strides = [1, 1]} : vector<4x290xbf16> to vector<4x256xbf16>
    %198 = vector.extract_strided_slice %133 {offsets = [0, 2], sizes = [4, 256], strides = [1, 1]} : vector<4x290xbf16> to vector<4x256xbf16>
    %c0_i32_46 = arith.constant 0 : i32
    %199 = arith.sitofp %c0_i32_46 : i32 to bf16
    %200 = vector.shape_cast %45 : vector<1x256xi1> to vector<1x256xi1>
    %201 = vector.broadcast %200 : vector<1x256xi1> to vector<4x256xi1>
    %202 = vector.broadcast %199 : bf16 to vector<4x256xbf16>
    %203 = arith.select %201, %198, %202 : vector<4x256xi1>, vector<4x256xbf16>
    %204 = vector.extract_strided_slice %133 {offsets = [0, 18], sizes = [4, 256], strides = [1, 1]} : vector<4x290xbf16> to vector<4x256xbf16>
    %c0_i32_47 = arith.constant 0 : i32
    %205 = arith.sitofp %c0_i32_47 : i32 to bf16
    %206 = vector.shape_cast %45 : vector<1x256xi1> to vector<1x256xi1>
    %207 = vector.broadcast %206 : vector<1x256xi1> to vector<4x256xi1>
    %208 = vector.broadcast %205 : bf16 to vector<4x256xbf16>
    %209 = arith.select %207, %204, %208 : vector<4x256xi1>, vector<4x256xbf16>
    %210 = vector.extract_strided_slice %133 {offsets = [0, 34], sizes = [4, 256], strides = [1, 1]} : vector<4x290xbf16> to vector<4x256xbf16>
    %c0_i32_48 = arith.constant 0 : i32
    %211 = arith.sitofp %c0_i32_48 : i32 to bf16
    %212 = vector.shape_cast %45 : vector<1x256xi1> to vector<1x256xi1>
    %213 = vector.broadcast %212 : vector<1x256xi1> to vector<4x256xi1>
    %214 = vector.broadcast %211 : bf16 to vector<4x256xbf16>
    %215 = arith.select %213, %210, %214 : vector<4x256xi1>, vector<4x256xbf16>
    %216 = tpu.concatenate %182, %188, %194, %195, %196, %197, %203, %209, %215 in 0 : vector<4x256xbf16>, vector<4x256xbf16>, vector<4x256xbf16>, vector<4x256xbf16>, vector<4x256xbf16>, vector<4x256xbf16>, vector<4x256xbf16>, vector<4x256xbf16>, vector<4x256xbf16> -> vector<36x256xbf16>
    %cst_49 = arith.constant dense<0.000000e+00> : vector<8x256xf32>
    %217 = tpu.matmul %176, %216, %cst_49 {dimension_numbers = #tpu.dot_dimension_numbers<[1], [0], [0], [1], [0, 0, 1, 1], [], []>} : vector<8x36xbf16>, vector<36x256xbf16>, vector<8x256xf32> -> vector<8x256xf32>
    %218 = tpu.concatenate %89, %175 in 0 : vector<8x64xf32>, vector<8x64xf32> -> vector<16x64xf32>
    %219 = tpu.concatenate %131, %217 in 0 : vector<8x256xf32>, vector<8x256xf32> -> vector<16x256xf32>
    %220 = arith.truncf %218 : vector<16x64xf32> to vector<16x64xbf16>
    %c0_50 = arith.constant 0 : index
    %c0_51 = arith.constant 0 : index
    %221 = vector.load %arg7[%c0_50, %c0_51] : memref<64x256xbf16, #tpu.memory_space<vmem>>, vector<64x256xbf16>
    %cst_52 = arith.constant dense<0.000000e+00> : vector<16x256xf32>
    %222 = tpu.matmul %220, %221, %cst_52 {dimension_numbers = #tpu.dot_dimension_numbers<[1], [0], [0], [1], [0, 0, 1, 1], [], []>} : vector<16x64xbf16>, vector<64x256xbf16>, vector<16x256xf32> -> vector<16x256xf32>
    %223 = arith.addf %222, %219 : vector<16x256xf32>
    %c0_53 = arith.constant 0 : index
    %c0_54 = arith.constant 0 : index
    %224 = vector.load %arg6[%c0_53, %c0_54] : memref<16x1xf32, #tpu.memory_space<vmem>>, vector<16x1xf32>
    %225 = vector.broadcast %224 : vector<16x1xf32> to vector<16x256xf32>
    %226 = arith.addf %223, %225 : vector<16x256xf32>
    %cst_55 = arith.constant 0.000000e+00 : f32
    %227 = vector.broadcast %cst_55 : f32 to vector<16x256xf32>
    %228 = arith.maximumf %226, %227 : vector<16x256xf32>
    %c0_56 = arith.constant 0 : index
    %c0_57 = arith.constant 0 : index
    %229 = vector.load %arg8[%c0_56, %c0_57] : memref<8x16xbf16, #tpu.memory_space<vmem>>, vector<8x16xbf16>
    %230 = arith.truncf %228 : vector<16x256xf32> to vector<16x256xbf16>
    %cst_58 = arith.constant dense<0.000000e+00> : vector<8x256xf32>
    %231 = tpu.matmul %229, %230, %cst_58 {dimension_numbers = #tpu.dot_dimension_numbers<[1], [0], [0], [1], [0, 0, 1, 1], [], []>} : vector<8x16xbf16>, vector<16x256xbf16>, vector<8x256xf32> -> vector<8x256xf32>
    %c0_59 = arith.constant 0 : index
    %c0_60 = arith.constant 0 : index
    %232 = memref.load %arg9[%c0_59, %c0_60] : memref<1x1xf32, #tpu.memory_space<smem>>
    %233 = vector.broadcast %232 : f32 to vector<8x256xf32>
    %234 = arith.addf %231, %233 : vector<8x256xf32>
    %235 = arith.negf %234 : vector<8x256xf32>
    %236 = math.exp %235 : vector<8x256xf32>
    %cst_61 = arith.constant 1.000000e+00 : f32
    %237 = vector.broadcast %cst_61 : f32 to vector<8x256xf32>
    %238 = arith.addf %237, %236 : vector<8x256xf32>
    %239 = arith.divf %237, %238 : vector<8x256xf32>
    %c0_62 = arith.constant 0 : index
    %c0_63 = arith.constant 0 : index
    %c0_64 = arith.constant 0 : index
    %240 = vector.load %arg3[%c0_62, %c0_63, %c0_64] : memref<1x8x256xf32, #tpu.memory_space<vmem>>, vector<1x8x256xf32>
    %241 = vector.shape_cast %240 : vector<1x8x256xf32> to vector<8x256xf32>
    %242 = arith.mulf %241, %239 : vector<8x256xf32>
    %c0_65 = arith.constant 0 : index
    %c0_66 = arith.constant 0 : index
    %c0_67 = arith.constant 0 : index
    %243 = vector.load %arg10[%c0_65, %c0_66, %c0_67] : memref<1x8x256xf32, #tpu.memory_space<vmem>>, vector<1x8x256xf32>
    %244 = vector.shape_cast %243 : vector<1x8x256xf32> to vector<8x256xf32>
    %245 = vector.shape_cast %242 : vector<8x256xf32> to vector<1x8x256xf32>
    tpu.vector_store %arg10[%c0_65, %c0_66, %c0_67], %245 {strides = array<i32>} : memref<1x8x256xf32, #tpu.memory_space<vmem>>, vector<1x8x256xf32>,
    return
  }
  func.func @transform_0(%arg0: i32) -> (i32, i32, i32) {
    %c0_i32 = arith.constant 0 : i32
    %c0_i32_0 = arith.constant 0 : i32
    %c0_i32_1 = arith.constant 0 : i32
    return %arg0, %c0_i32, %c0_i32_0 : i32, i32, i32
  }
  func.func @transform_1(%arg0: i32) -> (i32, i32, i32) {
    %c0_i32 = arith.constant 0 : i32
    %c0_i32_0 = arith.constant 0 : i32
    %c0_i32_1 = arith.constant 0 : i32
    return %arg0, %c0_i32, %c0_i32_0 : i32, i32, i32
  }
  func.func @transform_2(%arg0: i32) -> (i32, i32, i32) {
    %c0_i32 = arith.constant 0 : i32
    %c0_i32_0 = arith.constant 0 : i32
    %c0_i32_1 = arith.constant 0 : i32
    return %arg0, %c0_i32, %c0_i32_0 : i32, i32, i32
  }
  func.func @transform_3(%arg0: i32) -> (i32, i32) {
    %c0_i32 = arith.constant 0 : i32
    %c0_i32_0 = arith.constant 0 : i32
    %c0_i32_1 = arith.constant 0 : i32
    return %c0_i32, %c0_i32_0 : i32, i32
  }
  func.func @transform_4(%arg0: i32) -> (i32, i32) {
    %c0_i32 = arith.constant 0 : i32
    %c0_i32_0 = arith.constant 0 : i32
    %c0_i32_1 = arith.constant 0 : i32
    return %c0_i32, %c0_i32_0 : i32, i32
  }
  func.func @transform_5(%arg0: i32) -> (i32, i32) {
    %c0_i32 = arith.constant 0 : i32
    %c0_i32_0 = arith.constant 0 : i32
    %c0_i32_1 = arith.constant 0 : i32
    return %c0_i32, %c0_i32_0 : i32, i32
  }
  func.func @transform_6(%arg0: i32) -> (i32, i32) {
    %c0_i32 = arith.constant 0 : i32
    %c0_i32_0 = arith.constant 0 : i32
    %c0_i32_1 = arith.constant 0 : i32
    return %c0_i32, %c0_i32_0 : i32, i32
  }
  func.func @transform_7(%arg0: i32) -> (i32, i32) {
    %c0_i32 = arith.constant 0 : i32
    %c0_i32_0 = arith.constant 0 : i32
    %c0_i32_1 = arith.constant 0 : i32
    return %c0_i32, %c0_i32_0 : i32, i32
  }
  func.func @transform_8(%arg0: i32) -> (i32, i32) {
    %c0_i32 = arith.constant 0 : i32
    %c0_i32_0 = arith.constant 0 : i32
    %c0_i32_1 = arith.constant 0 : i32
    return %c0_i32, %c0_i32_0 : i32, i32
  }
  func.func @transform_9(%arg0: i32) -> (i32, i32, i32) {
    %c0_i32 = arith.constant 0 : i32
    %c0_i32_0 = arith.constant 0 : i32
    %c0_i32_1 = arith.constant 0 : i32
    return %arg0, %c0_i32, %c0_i32_0 : i32, i32, i32
  }
}

</mosaic_0001>

<bundles_post_ra>
// kernel: tpu_custom_call.1
= control target key start
LH: loop header
LB: loop body
LE: loop exit
PB: predicated region body
PF: predicated region fallthrough
CT: control target
= control target key end

     0   :  { %15 = vsyncpa [#allocation4], 0  ;;  %s1623_s0 = inlined_call_operand.hbm [shape: bf16[1,8,82], index: 0, kind: input, shape index: {}]   ;;  %s1624_s1 = inlined_call_operand.vmem [shape: bf16[1,8,290], index: 1, kind: input, shape index: {}]   ;;  %s1625_s2 = inlined_call_operand.vmem [shape: f32[1,8,256], index: 2, kind: input, shape index: {}]   ;;  %s1626_s3 = inlined_call_operand.vmem [shape: bf16[8,36], index: 3, kind: input, shape index: {}]   ;;  %s1627_s4 = inlined_call_operand.hbm [shape: bf16[8,36], index: 4, kind: input, shape index: {}]   ;;  %s1628_s5 = inlined_call_operand.vmem [shape: f32[16,1], index: 5, kind: input, shape index: {}]   ;;  %s1629_s6 = inlined_call_operand.hbm [shape: bf16[64,256], index: 6, kind: input, shape index: {}]   ;;  %s1630_s7 = inlined_call_operand.vmem [shape: bf16[8,16], index: 7, kind: input, shape index: {}]   ;;  %s1631_s8 = inlined_call_operand.<no memory space> [shape: f32[1,1], index: 8, kind: input, shape index: {}]   ;;  %s1632_s9 = inlined_call_operand.hbm [shape: f32[1,8,256], index: 9, kind: output, shape index: {}]  }
   0x1   :  { %16 = vsyncpa [#allocation7], 0 }
   0x2   :  { %17 = vsyncpa [#allocation5], 0  ;;  %s1189_s30 = smov [#allocation6]   ;;  %s1190_s11 = smov [#allocation3]  }
   0x3   :  { %s40_s10 = sshll.u32 %s1189_s30, 4  ;;  %s24_s12 = sshll.u32 %s1190_s11, 4  ;;  %s41_s10 = int_to_ptr.vmem [resolvable:$true] %s40_s10  ;;  %s25_s12 = int_to_ptr.vmem [resolvable:$true] %s24_s12 }
   0x4   :  { %s1095_s15 = scalar_lea.hbm %s1627_s4, 64 }
   0x5   :  { %p1096_p0 = scmp.ne.s32.totalorder %s1627_s4, %s1095_s15  ;;  %p1099_p1 = scmp.lt.u32.totalorder %s1095_s15, %s1627_s4 }
   0x7   :  { %p1101_p2 = pnand %p1099_p1, %p1096_p0 }
   0x9   :  { %1104 = shalt.err (!%p1101_p2)
}
   0xa   :  { %s1105_s20 = scalar_lea.vmem %s41_s10, 64  ;;  %p1110_p4 = scmp.lt.s32.totalorder %s41_s10, %s41_s10 }
   0xb   :  { %p1106_p3 = scmp.ne.s32.totalorder %s41_s10, %s1105_s20  ;;  %p1111_p5 = scmp.lt.s32.totalorder %s1105_s20, %s1105_s20 }
   0xd   :  { %p1112_p6 = por %p1111_p5, %p1110_p4 }
   0xf   :  { %p1113_p7 = pnand %p1112_p6, %p1106_p3 }
  0x11   :  { %1116 = shalt.err (!%p1113_p7)
}
  0x12   :  { %43 = dma.hbm_to_vmem [thread:$0]  %s1627_s4, 64, %s41_s10, [#allocation7]  }
  0x13   :  { %s1117_s25 = scalar_lea.hbm %s1623_s0, 64 }
  0x14   :  { %p1118_p8 = scmp.ne.s32.totalorder %s1623_s0, %s1117_s25  ;;  %p1121_p9 = scmp.lt.u32.totalorder %s1117_s25, %s1623_s0 }
  0x16   :  { %p1123_p10 = pnand %p1121_p9, %p1118_p8 }
  0x18   :  { %1126 = shalt.err (!%p1123_p10)
}
  0x19   :  { %s1127_s30 = scalar_lea.vmem %s25_s12, 64  ;;  %p1132_p12 = scmp.lt.s32.totalorder %s25_s12, %s25_s12 }
  0x1a   :  { %p1128_p11 = scmp.ne.s32.totalorder %s25_s12, %s1127_s30  ;;  %p1133_p13 = scmp.lt.s32.totalorder %s1127_s30, %s1127_s30 }
  0x1c   :  { %p1134_p0 = por %p1133_p13, %p1132_p12 }
  0x1e   :  { %p1135_p1 = pnand %p1134_p0, %p1128_p11 }
  0x20   :  { %1138 = shalt.err (!%p1135_p1)
}
  0x21   :  { %27 = dma.hbm_to_vmem [thread:$0]  %s1623_s0, 64, %s25_s12, [#allocation4]  }
  0x22   :  { %s1191_s11 = smov [#allocation8]   ;;  %s1139_s16 = scalar_lea.hbm %s1629_s6, 1024 }
  0x23   :  { %s51_s13 = sshll.u32 %s1191_s11, 4  ;;  %p1140_p2 = scmp.ne.s32.totalorder %s1629_s6, %s1139_s16  ;;  %s52_s13 = int_to_ptr.vmem [resolvable:$true] %s51_s13 }
  0x24   :  { %p1143_p3 = scmp.lt.u32.totalorder %s1139_s16, %s1629_s6 }
  0x26   :  { %p1145_p4 = pnand %p1143_p3, %p1140_p2 }
  0x28   :  { %1148 = shalt.err (!%p1145_p4)
}
  0x29   :  { %s1149_s21 = scalar_lea.vmem %s52_s13, 1024  ;;  %p1154_p6 = scmp.lt.s32.totalorder %s52_s13, %s52_s13 }
  0x2a   :  { %p1150_p5 = scmp.ne.s32.totalorder %s52_s13, %s1149_s21  ;;  %p1155_p7 = scmp.lt.s32.totalorder %s1149_s21, %s1149_s21 }
  0x2c   :  { %p1156_p8 = por %p1155_p7, %p1154_p6 }
  0x2e   :  { %p1157_p9 = pnand %p1156_p8, %p1150_p5 }
  0x30   :  { %1160 = shalt.err (!%p1157_p9)
}
  0x31   :  { %s1192_s0 = smov 128   ;;  %s1193_s12 = smov 8  }
  0x32   :  { %57 = dma.hbm_to_vmem [thread:$0]  %s1629_s6, 1024, %s52_s13, [#allocation7], %s1192_s0, %s1192_s0, %s1193_s12  }
  0x33   :  { %1183 = dma.done.wait [#allocation4], 64  }
  0x34   :  { %1184 = vsyncadd [#allocation4], 4294967232  ;;  %v77_v0 = vlaneseq }
  0x35   :  { %1185 = dma.done.wait [#allocation7], 1088  }
  0x36   :  { %1186 = vsyncadd [#allocation7], 4294966208  ;;  %v1194_v1 = vmov 0   ;;  %v1303_v2 = vand.u32 127, %v77_v0  ;;  %v1314_v5 = vld [vmem:[#allocation3] sm:$0xf] }
  0x37   :  { %525 = vmatprep.mubr.bf16.mxu1 %v1194_v1  ;;  %1069 = vset.pattern.permute.xlu0 %v1194_v1  ;;  %s1195_s6 = smov 10   ;;  %v972_v8 = vcombine.low %v1314_v5, %v1314_v5  ;;  %s1196_s24 = smov 16   ;;  %v1202_v11 = vmov 0.0   ;;  %vm1205_vm9 = vmmov 0   ;;  %v1372_v39 = vld [vmem:[%s1624_s1 + $0x8] sm:$0xf] }
  0x38   :  { %1070 = vset.pattern.permute.xlu1 %v1194_v1  ;;  %v83_v3 = vand.u32 7, %v1303_v2  ;;  %s1197_s25 = smov 2   ;;  %s1198_s26 = smov 18   ;;  %1023 = vmatprep.subr.bf16.mxu0 %v1202_v11  ;;  %v93_v29 = vadd.s32 128, %v1303_v2  ;;  %v98_v30 = vand.u32 15, %v1303_v2  ;;  %v1378_v40 = vld [vmem:[%s1624_s1] sm:$0xff]  ;;  %v987_v41 = vcombine.low %v1372_v39, %v1372_v39 }
  0x39   :  { %v166_v9 = vrot.slane %v972_v8, 2  ;;  %s1199_s27 = smov 127   ;;  %v171_v10 = vrot.slane %v972_v8, 6  ;;  %s1200_s28 = smov 119   ;;  %1029 = vmatprep.mubr.msk.bf16.mxu0 %vm1205_vm9, %v1202_v11  ;;  %v986_v42 = vcombine.high %v1378_v40, %v1378_v40  ;;  %v985_v45 = vcombine.low %v1378_v40, %v1378_v40 }
  0x3a   :  { %vm1307_vm0 = vcmp.ne.s32.totalorder %v83_v3, 0  ;;  %vm92_vm1 = vcmp.ne.s32.totalorder %v83_v3, 7  ;;  %s1201_s29 = smov 111   ;;  %s1203_s30 = smov 120   ;;  %v105_v31 = vand.u32 15, %v93_v29  ;;  %vm1346_vm10 = vcmp.ne.s32.totalorder %v98_v30, 0 }
  0x3b   :  { %vm125_vm2 = vmpackc.low %vm1307_vm0, %vm1307_vm0  ;;  %s1204_s4 = smov 112   ;;  %s1206_s10 = smov 126   ;;  %vm120_vm13 = vcmp.ne.s32.totalorder %v98_v30, 15  ;;  %v367_v43 = vrot.slane %v987_v41, 2  ;;  %v366_v44 = vrot.slane %v986_v42, 2  ;;  %v365_v46 = vrot.slane %v985_v45, 2 }
  0x3c   :  { %v127_v6 = vsel %vm125_vm2, 65537, %v1194_v1  ;;  %vm138_vm3 = vmpackc.low %vm92_vm1, %vm92_vm1  ;;  %s1207_s11 = smov 118   ;;  %s1208_s13 = smov 110   ;;  %vm1350_vm11 = vcmp.ne.s32.totalorder %v105_v31, 0  ;;  %vm121_vm14 = vcmp.ne.s32.totalorder %v105_v31, 15  ;;  %v387_v47 = vrot.slane %v986_v42, 6 }
  0x3d   :  { %128 = vrot.lane.b32.xlu0 %v127_v6, %s1193_s12  ;;  %v139_v7 = vsel %vm138_vm3, 65537, %v1194_v1  ;;  %vm261_vm12 = vmpackc.low %vm1350_vm11, %vm1346_vm10  ;;  %s1209_s18 = smov 32   ;;  %s1210_s19 = smov 34   ;;  %v388_v48 = vrot.slane %v987_v41, 6  ;;  %v386_v49 = vrot.slane %v985_v45, 6  ;;  %v126_v53 = vsel %vm125_vm2, %v1314_v5, 0 }
  0x3e   :  { %144 = vrot.lane.b32.xlu1 %v139_v7, %s1195_s6  ;;  %v263_v36 = vsel %vm261_vm12, 65537, %v1194_v1  ;;  %vm286_vm15 = vmpackc.low %vm121_vm14, %vm120_vm13  ;;  %s1211_s1 = smov 95   ;;  %vm190_vm1 = vcmask 1041408   ;;  %vm194_vm3 = vcmask 1043456   ;;  %v999_v2 = vcombine.low %v126_v53, %v126_v53  ;;  %s1213_s0 = smov 94  }
  0x3f   :  { %v287_v38 = vsel %vm286_vm15, 65537, %v1194_v1  ;;  %vm209_vm0 = vcmask 293888   ;;  %vm276_vm2 = vcmask 261120   ;;  %vm432_vm10 = vcmask 900096  }
  0x40   :  { %vm449_vm11 = vcmask 769024  }
  0x41   :  { %132 = vrot.lane.b32.xlu0 %v127_v6, %s1196_s24  ;;  %v537_v6 = vrot.slane %v999_v2, 2 }
  0x42   :  { %140 = vrot.lane.b32.xlu1 %v139_v7, %s1197_s25 }
  0x45   :  { %148 = vrot.lane.b32.xlu0 %v139_v7, %s1198_s26 }
  0x46   :  { %167 = vrot.lane.b32.xlu1 %v166_v9, %s1199_s27 }
  0x49   :  { %169 = vrot.lane.b32.xlu0 %v972_v8, %s1200_s28 }
  0x4a   :  { %172 = vrot.lane.b32.xlu1 %v171_v10, %s1201_s29 }
  0xaf   :  { %v129_v12 = vpop.permute.xlu0 %128 }
  0xb0   :  { %vm130_vm4 = vcmp.ne.s16.totalorder %v129_v12, 0  ;;  %v145_v13 = vpop.permute.xlu1 %144 }
  0xb1   :  { %v131_v14 = vsel %vm130_vm4, %v1314_v5, 0  ;;  %vm146_vm5 = vcmp.ne.s16.totalorder %v145_v13, 0  ;;  %vm197_vm4 = vcmask 1045504  }
  0xb2   :  { %v970_v15 = vcombine.low %v131_v14, %v131_v14  ;;  %v147_v19 = vsel %vm146_vm5, %v1314_v5, 0  ;;  %vm267_vm5 = vcmask 130048  }
  0xb3   :  { %v133_v16 = vpop.permute.xlu0 %132  ;;  %v974_v24 = vcombine.low %v147_v19, %v147_v19 }
  0xb4   :  { %v155_v17 = vrot.slane %v970_v15, 6  ;;  %vm134_vm6 = vcmp.ne.s16.totalorder %v133_v16, 0  ;;  %v141_v18 = vpop.permute.xlu1 %140 }
  0xb5   :  { %v135_v20 = vsel %vm134_vm6, %v1314_v5, 0  ;;  %vm142_vm7 = vcmp.ne.s16.totalorder %v141_v18, 0  ;;  %v182_v27 = vrot.slane %v974_v24, 2 }
  0xb6   :  { %v971_v21 = vcombine.low %v135_v20, %v135_v20  ;;  %156 = vrot.lane.b32.xlu1 %v155_v17, %s1203_s30  ;;  %v143_v22 = vsel %vm142_vm7, %v1314_v5, 0  ;;  %vm309_vm7 = vcmask 277504  }
  0xb7   :  { %v149_v23 = vpop.permute.xlu0 %148  ;;  %v973_v25 = vcombine.low %v143_v22, %v143_v22 }
  0xb8   :  { %161 = vrot.lane.b32.xlu0 %v971_v21, %s1204_s4  ;;  %vm150_vm8 = vcmp.ne.s16.totalorder %v149_v23, 0  ;;  %v540_v34 = vrot.slane %v971_v21, 6  ;;  %v168_v50 = vpop.permute.xlu1 %167 }
  0xb9   :  { %v151_v26 = vsel %vm150_vm8, %v1314_v5, 0  ;;  %v549_v35 = vrot.slane %v973_v25, 6 }
  0xba   :  { %538 = vrot.lane.b32.xlu1 %v970_v15, %s1203_s30  ;;  %v975_v28 = vcombine.low %v151_v26, %v151_v26 }
  0xbb   :  { %v170_v52 = vpop.permute.xlu0 %169 }
  0xbc   :  { %177 = vrot.lane.b32.xlu0 %v973_v25, %s1206_s10  ;;  %v554_v37 = vrot.slane %v975_v28, 2  ;;  %v173_v51 = vpop.permute.xlu1 %172 }
  0xbd   :  { %v203_v60 = vsel %vm190_vm1, %v170_v52, %v173_v51 }
  0xbe   :  { %183 = vrot.lane.b32.xlu1 %v182_v27, %s1207_s11 }
  0xc0   :  { %188 = vrot.lane.b32.xlu0 %v975_v28, %s1208_s13 }
  0xc2   :  { %543 = vrot.lane.b32.xlu1 %v972_v8, %s1199_s27 }
  0xc4   :  { %545 = vrot.lane.b32.xlu0 %v166_v9, %s1200_s28 }
  0xc6   :  { %547 = vrot.lane.b32.xlu1 %v972_v8, %s1201_s29  ;;  %v122_v8 = vld [vmem:[%s1626_s3] sm:$0xf]  ;;  %s1212_s3 = smov 96  }
  0xc8   :  { %541 = vrot.lane.b32.xlu0 %v540_v34, %s1204_s4 }
  0xca   :  { %552 = vrot.lane.b32.xlu1 %v974_v24, %s1207_s11 }
  0xcc   :  { %550 = vrot.lane.b32.xlu0 %v549_v35, %s1206_s10 }
  0xce   :  { %264 = vrot.lane.b32.xlu1 %v263_v36, %s1196_s24 }
  0xd0   :  { %555 = vrot.lane.b32.xlu0 %v554_v37, %s1208_s13 }
  0xd2   :  { %297 = vrot.lane.b32.xlu1 %v287_v38, %s1198_s26 }
  0xd4   :  { %273 = vrot.lane.b32.xlu0 %v263_v36, %s1209_s18 }
  0xd6   :  { %306 = vrot.lane.b32.xlu1 %v287_v38, %s1210_s19 }
  0xd8   :  { %288 = vrot.lane.b32.xlu0 %v287_v38, %s1197_s25 }
  0xda   :  { %372 = vrot.lane.b32.xlu1 %v367_v43, %s1199_s27 }
  0xdc   :  { %370 = vrot.lane.b32.xlu0 %v366_v44, %s1199_s27 }
  0xde   :  { %379 = vrot.lane.b32.xlu1 %v986_v42, %s1201_s29 }
  0xe0   :  { %368 = vrot.lane.b32.xlu0 %v365_v46, %s1199_s27 }
  0xe2   :  { %391 = vrot.lane.b32.xlu1 %v387_v47, %s1211_s1 }
  0xe4   :  { %381 = vrot.lane.b32.xlu0 %v987_v41, %s1201_s29 }
  0xe6   :  { %377 = vrot.lane.b32.xlu1 %v985_v45, %s1201_s29 }
  0xe8   :  { %393 = vrot.lane.b32.xlu0 %v388_v48, %s1211_s1 }
  0xea   :  { %641 = vrot.lane.b32.xlu1 %v987_v41, %s1199_s27 }
  0xec   :  { %389 = vrot.lane.b32.xlu0 %v386_v49, %s1211_s1 }
  0xee   :  { %647 = vrot.lane.b32.xlu1 %v366_v44, %s1201_s29 }
  0xf0   :  { %639 = vrot.lane.b32.xlu0 %v986_v42, %s1199_s27 }
  0xf2   :  { %655 = vrot.lane.b32.xlu1 %v986_v42, %s1211_s1 }
  0xf4   :  { %637 = vrot.lane.b32.xlu0 %v985_v45, %s1199_s27 }
  0xf6   :  { %645 = vrot.lane.b32.xlu1 %v365_v46, %s1201_s29 }
  0xf8   :  { %649 = vrot.lane.b32.xlu0 %v367_v43, %s1201_s29  ;;  %s1214_s29 = smov [#allocation9]  }
  0xf9   :  { %s960_s30 = sshll.u32 %s1214_s29, 4  ;;  %s961_s30 = int_to_ptr.vmem [resolvable:$true] %s960_s30 }
  0xfa   :  { %p1166_p11 = scmp.lt.s32.totalorder %s961_s30, %s961_s30 }
  0xfc   :  { %657 = vrot.lane.b32.xlu0 %v987_v41, %s1211_s1 }
 0x100   :  { %653 = vrot.lane.b32.xlu0 %v985_v45, %s1211_s1 }
 0x128   :  { %v157_v54 = vpop.permute.xlu1 %156 }
 0x129   :  { %v193_v55 = vsel %vm190_vm1, %v126_v53, %v157_v54 }
 0x12a   :  { %v162_v56 = vpop.permute.xlu0 %161 }
 0x12b   :  { %v196_v57 = vsel %vm194_vm3, %v193_v55, %v162_v56 }
 0x12c   :  { %v539_v58 = vpop.permute.xlu1 %538  ;;  %v199_v59 = vsel %vm197_vm4, %v196_v57, %v168_v50 }
 0x12d   :  { %1024 = vmatpush3.bf16.msra.mxu0 %v199_v59  ;;  %v559_v10 = vsel %vm190_vm1, %v537_v6, %v539_v58 }
 0x12e   :  { %v178_v61 = vpop.permute.xlu0 %177  ;;  %1025 = vmatprep.subr.bf16.mxu0 %v1202_v11 }
 0x12f   :  { %v205_v62 = vsel %vm194_vm3, %v203_v60, %v178_v61 }
 0x130   :  { %v184_v63 = vpop.permute.xlu1 %183 }
 0x131   :  { %v207_v0 = vsel %vm197_vm4, %v205_v62, %v184_v63 }
 0x132   :  { %v189_v3 = vpop.permute.xlu0 %188  ;;  %1026 = vmatpush3.bf16.msra.mxu0 %v207_v0 }
 0x133   :  { %1027 = vmatprep.subr.bf16.mxu0 %v1202_v11  ;;  %v214_v5 = vsel %vm190_vm1, %v189_v3, 0 }
 0x134   :  { %v544_v4 = vpop.permute.xlu1 %543 }
 0x136   :  { %v546_v7 = vpop.permute.xlu0 %545  ;;  %1028 = vmatpush3.bf16.msra.mxu0 %v214_v5 }
 0x137   :  { %1033 = vmatprep.subr.bf16.mxu0 %v1202_v11 }
 0x138   :  { %v548_v9 = vpop.permute.xlu1 %547 }
 0x139   :  { %1030 = vmatmul.mubr.msk.bf16.vlgmr.msra.gmra.mrb[0].mxu0 %vm209_vm0, %v122_v8  ;;  %v567_v16 = vsel %vm190_vm1, %v546_v7, %v548_v9 }
 0x13a   :  { %v542_v12 = vpop.permute.xlu0 %541  ;;  %1039 = vmatprep.mubr.msk.bf16.mxu0 %vm1205_vm9, %v1202_v11 }
 0x13b   :  { %v561_v13 = vsel %vm194_vm3, %v559_v10, %v542_v12 }
 0x13c   :  { %v553_v14 = vpop.permute.xlu1 %552  ;;  %v563_v15 = vsel %vm197_vm4, %v561_v13, %v544_v4 }
 0x13d   :  { %1034 = vmatpush3.bf16.msra.mxu0 %v563_v15 }
 0x13e   :  { %v551_v17 = vpop.permute.xlu0 %550  ;;  %1035 = vmatprep.subr.bf16.mxu0 %v1202_v11 }
 0x13f   :  { %v569_v18 = vsel %vm194_vm3, %v567_v16, %v551_v17 }
 0x140   :  { %v265_v19 = vpop.permute.xlu1 %264  ;;  %v571_v20 = vsel %vm197_vm4, %v569_v18, %v553_v14 }
 0x141   :  { %1036 = vmatpush3.bf16.msra.mxu0 %v571_v20  ;;  %v266_v24 = vrot.slane %v265_v19, 4  ;;  %v1075_v20 = vld [vmem:[#allocation8] ss:$8 sps:$4 sm:$0xff]  }
 0x142   :  { %v556_v21 = vpop.permute.xlu0 %555  ;;  %1037 = vmatprep.subr.bf16.mxu0 %v1202_v11 }
 0x143   :  { %v574_v22 = vsel %vm190_vm1, %v556_v21, 0  ;;  %vm270_vm8 = vcmp.ne.s16.totalorder %v266_v24, 0  ;;  %v268_v34 = vsel %vm267_vm5, %v266_v24, %v265_v19  ;;  %v1077_v21 = vld [vmem:[#allocation8 + $0x4] ss:$8 sps:$4 sm:$0xff]   ;;  %v1078_v24 = vld [vmem:[#allocation8 + $0x10] ss:$8 sps:$4 sm:$0xff]  }
 0x144   :  { %v1431_v23 = vpop.permute.xlu1 %297  ;;  %v272_v38 = vsel %vm270_vm8, %v1372_v39, 0 }
 0x145   :  { %1038 = vmatpush3.bf16.msra.mxu0 %v574_v22  ;;  %v981_v46 = vcombine.low %v272_v38, %v272_v38  ;;  %v299_v58 = vrot.slane %v1431_v23, 4  ;;  %v1080_v22 = vld [vmem:[#allocation8 + $0x14] ss:$8 sps:$4 sm:$0xff]  }
 0x146   :  { %v274_v25 = vpop.permute.xlu0 %273  ;;  %823 = vmatprep.subr.bf16.mxu0 %v1077_v21 }
 0x147   :  { %v275_v26 = vrot.slane %v274_v25, 4  ;;  %v330_v7 = vrot.slane %v981_v46, 6 }
 0x148   :  { %v307_v27 = vpop.permute.xlu1 %306  ;;  %1040 = vmatmul.mubr.msk.bf16.vlgmr.msra.gmra.mrb[4].mxu0 %vm209_vm0, %v122_v8 }
 0x149   :  { %vm279_vm6 = vcmp.ne.s16.totalorder %v275_v26, 0  ;;  %855 = vmatprep.mubr.bf16.mxu0 %v1194_v1  ;;  %v308_v28 = vrot.slane %v307_v27, 4  ;;  %v277_v29 = vsel %vm276_vm2, %v275_v26, %v274_v25  ;;  %vm269_vm2 = vcmp.ne.s16.totalorder %v268_v34, 0  ;;  %824 = vmatpush1.bf16.msra.mxu0 %v1075_v20  ;;  %v1083_v25 = vld [vmem:[#allocation8 + $0x24] ss:$8 sps:$4 sm:$0xff]  }
 0x14a   :  { %v289_v11 = vpop.permute.xlu0 %288  ;;  %v281_v31 = vsel %vm279_vm6, %v1372_v39, 0  ;;  %vm278_vm15 = vcmp.ne.s16.totalorder %v277_v29, 0  ;;  %vm291_vm6 = vcmask 15360   ;;  %v271_v50 = vsel %vm269_vm2, %v1378_v40, 0  ;;  %825 = vmatprep.subr.bf16.mxu0 %v1080_v22 }
 0x14b   :  { %v290_v30 = vrot.slane %v289_v11, 4  ;;  %v310_v35 = vsel %vm309_vm7, %v308_v28, %v307_v27  ;;  %vm312_vm9 = vcmp.ne.s16.totalorder %v308_v28, 0  ;;  %v984_v36 = vcombine.low %v281_v31, %v281_v31  ;;  %v1081_v27 = vld [vmem:[#allocation8 + $0x20] ss:$8 sps:$4 sm:$0xff]   ;;  %v1086_v28 = vld [vmem:[#allocation8 + $0x34] ss:$8 sps:$4 sm:$0xff]  }
 0x14c   :  { %vm311_vm13 = vcmp.ne.s16.totalorder %v310_v35, 0  ;;  %v314_v37 = vsel %vm312_vm9, %v1372_v39, 0  ;;  %vm374_vm7 = vcmask 1039360   ;;  %v280_v47 = vsel %vm278_vm15, %v1378_v40, 0  ;;  %v1488_v26 = vpop.permute.xlu1 %372  ;;  %v866_v35 = vld [vmem:[%s1628_s5] sm:$0xff] }
 0x14d   :  { %vm294_vm14 = vcmp.ne.s16.totalorder %v290_v30, 0  ;;  %352 = vrot.lane.b32.xlu0 %v984_v36, %s1212_s3  ;;  %v1440_v41 = vcombine.low %v314_v37, %v314_v37  ;;  %v313_v44 = vsel %vm311_vm13, %v1378_v40, 0  ;;  %v292_v51 = vsel %vm291_vm6, %v290_v30, %v289_v11  ;;  %826 = vmatpush1.bf16.msra.mxu0 %v1078_v24  ;;  %v1084_v30 = vld [vmem:[#allocation8 + $0x30] ss:$8 sps:$4 sm:$0xff]  }
 0x14e   :  { %v296_v42 = vsel %vm294_vm14, %v1372_v39, 0  ;;  %v1443_v43 = vpop.permute.xlu0 %370  ;;  %v995_v48 = vcombine.high %v313_v44, %v313_v44  ;;  %v983_v53 = vcombine.high %v280_v47, %v280_v47  ;;  %vm293_vm8 = vcmp.ne.s16.totalorder %v292_v51, 0  ;;  %827 = vmatprep.subr.bf16.mxu0 %v1083_v25 }
 0x14f   :  { %v990_v45 = vcombine.low %v296_v42, %v296_v42  ;;  %447 = vrot.lane.b32.xlu1 %v1440_v41, %s1213_s0  ;;  %v980_v54 = vcombine.high %v271_v50, %v271_v50  ;;  %v982_v55 = vcombine.low %v280_v47, %v280_v47  ;;  %v295_v56 = vsel %vm293_vm8, %v1378_v40, 0 }
 0x150   :  { %v979_v57 = vcombine.low %v271_v50, %v271_v50  ;;  %vm300_vm9 = vcmask 146432   ;;  %v989_v59 = vcombine.high %v295_v56, %v295_v56  ;;  %v628_v60 = vrot.slane %v984_v36, 6  ;;  %v380_v29 = vpop.permute.xlu1 %379  ;;  %v867_v36 = vld [vmem:[%s1628_s5 + $0x8] sm:$0xff] }
 0x151   :  { %410 = vrot.lane.b32.xlu0 %v990_v45, %s1206_s10  ;;  %v301_v61 = vsel %vm300_vm9, %v299_v58, %v1431_v23  ;;  %v988_v62 = vcombine.low %v295_v56, %v295_v56  ;;  %v329_v63 = vrot.slane %v980_v54, 6  ;;  %vm303_vm14 = vcmp.ne.s16.totalorder %v299_v58, 0  ;;  %828 = vmatpush1.bf16.msra.mxu0 %v1081_v27 }
 0x152   :  { %v369_v49 = vpop.permute.xlu0 %368  ;;  %vm302_vm13 = vcmp.ne.s16.totalorder %v301_v61, 0  ;;  %v994_v0 = vcombine.low %v313_v44, %v313_v44  ;;  %v305_v3 = vsel %vm303_vm14, %v1372_v39, 0  ;;  %v328_v5 = vrot.slane %v979_v57, 6  ;;  %829 = vmatprep.subr.bf16.mxu0 %v1086_v28 }
 0x153   :  { %v1453_v52 = vsel %vm374_vm7, %v369_v49, %v1443_v43  ;;  %622 = vrot.lane.b32.xlu1 %v981_v46, %s1204_s4  ;;  %v304_v2 = vsel %vm302_vm13, %v1378_v40, 0  ;;  %v993_v6 = vcombine.low %v305_v3, %v305_v3  ;;  %v627_v13 = vrot.slane %v983_v53, 6 }
 0x154   :  { %v992_v4 = vcombine.high %v304_v2, %v304_v2  ;;  %v991_v8 = vcombine.low %v304_v2, %v304_v2  ;;  %v663_v39 = vrot.slane %v990_v45, 6  ;;  %v626_v14 = vrot.slane %v982_v55, 6  ;;  %v392_v34 = vpop.permute.xlu1 %391 }
 0x155   :  { %445 = vrot.lane.b32.xlu0 %v995_v48, %s1213_s0  ;;  %v425_v10 = vrot.slane %v993_v6, 2  ;;  %v662_v15 = vrot.slane %v989_v59, 6  ;;  %v661_v16 = vrot.slane %v988_v62, 6  ;;  %v681_v17 = vrot.slane %v995_v48, 2  ;;  %830 = vmatpush1.bf16.msra.mxu0 %v1084_v30 }
 0x156   :  { %v424_v9 = vrot.slane %v992_v4, 2  ;;  %v423_v12 = vrot.slane %v991_v8, 2  ;;  %v680_v18 = vrot.slane %v994_v0, 2  ;;  %v682_v19 = vrot.slane %v1440_v41, 2  ;;  %v382_v23 = vpop.permute.xlu0 %381 }
 0x157   :  { %350 = vrot.lane.b32.xlu1 %v983_v53, %s1212_s3  ;;  %vm354_vm15 = vcmask 785408   ;;  %vm383_vm2 = vcmask 908288   ;;  %vm395_vm6 = vcmask 777216   ;;  %vm337_vm8 = vcmask 916480  }
 0x158   :  { %v378_v38 = vpop.permute.xlu1 %377  ;;  %vm412_vm9 = vcmask 1031168  }
 0x159   :  { %620 = vrot.lane.b32.xlu0 %v980_v54, %s1204_s4 }
 0x15a   :  { %v394_v11 = vpop.permute.xlu0 %393 }
 0x15b   :  { %348 = vrot.lane.b32.xlu1 %v982_v55, %s1212_s3 }
 0x15c   :  { %v1500_v42 = vpop.permute.xlu1 %641 }
 0x15d   :  { %618 = vrot.lane.b32.xlu0 %v979_v57, %s1204_s4 }
 0x15e   :  { %v390_v31 = vpop.permute.xlu0 %389 }
 0x15f   :  { %408 = vrot.lane.b32.xlu1 %v989_v59, %s1206_s10 }
 0x160   :  { %v1504_v45 = vpop.permute.xlu1 %647 }
 0x161   :  { %633 = vrot.lane.b32.xlu0 %v628_v60, %s1212_s3 }
 0x162   :  { %v1496_v37 = vpop.permute.xlu0 %639 }
 0x163   :  { %406 = vrot.lane.b32.xlu1 %v988_v62, %s1206_s10 }
 0x164   :  { %v1508_v47 = vpop.permute.xlu1 %655 }
 0x165   :  { %333 = vrot.lane.b32.xlu0 %v329_v63, %s1204_s4  ;;  %v262_v63 = vsel %vm261_vm12, %v1378_v40, 0  ;;  %v385_v40 = vsel %vm383_vm2, %v380_v29, %v382_v23  ;;  %vm819_vm12 = vcmask 523264  }
 0x166   :  { %v1498_v41 = vpop.permute.xlu0 %637  ;;  %v977_v3 = vcombine.low %v262_v63, %v262_v63 }
 0x167   :  { %443 = vrot.lane.b32.xlu1 %v994_v0, %s1213_s0 }
 0x168   :  { %v1512_v49 = vpop.permute.xlu1 %645 }
 0x169   :  { %331 = vrot.lane.b32.xlu0 %v328_v5, %s1204_s4 }
 0x16a   :  { %v1502_v44 = vpop.permute.xlu0 %649 }
 0x16b   :  { %335 = vrot.lane.b32.xlu1 %v330_v7, %s1204_s4  ;;  %v978_v7 = vcombine.high %v262_v63, %v262_v63  ;;  %v256_v63 = vld [vmem:[#allocation6] sm:$0xf]  ;;  %s1161_s4 = scalar_lea.vmem %s961_s30, 256 }
 0x16c   :  { %p1162_p10 = scmp.ne.s32.totalorder %s961_s30, %s1161_s4  ;;  %p1167_p12 = scmp.lt.s32.totalorder %s1161_s4, %s1161_s4 }
 0x16d   :  { %428 = vrot.lane.b32.xlu0 %v424_v9, %s1208_s13  ;;  %v397_v9 = vsel %vm395_vm6, %v392_v34, %v394_v11  ;;  %v617_v25 = vrot.slane %v978_v7, 2 }
 0x16e   :  { %v1506_v46 = vpop.permute.xlu0 %657  ;;  %v473_v20 = vsel %vm190_vm1, %v385_v40, %v397_v9  ;;  %p1168_p13 = por %p1167_p12, %p1166_p11 }
 0x16f   :  { %430 = vrot.lane.b32.xlu1 %v425_v10, %s1208_s13 }
 0x170   :  { %p1169_p0 = pnand %p1168_p13, %p1162_p10 }
 0x171   :  { %426 = vrot.lane.b32.xlu0 %v423_v12, %s1208_s13 }
 0x172   :  { %v1510_v48 = vpop.permute.xlu0 %653 }
 0x173   :  { %631 = vrot.lane.b32.xlu1 %v627_v13, %s1212_s3 }
 0x175   :  { %668 = vrot.lane.b32.xlu0 %v663_v39, %s1206_s10 }
 0x177   :  { %629 = vrot.lane.b32.xlu1 %v626_v14, %s1212_s3 }
 0x179   :  { %674 = vrot.lane.b32.xlu0 %v992_v4, %s1208_s13 }
 0x17b   :  { %666 = vrot.lane.b32.xlu1 %v662_v15, %s1206_s10 }
 0x17d   :  { %672 = vrot.lane.b32.xlu0 %v991_v8, %s1208_s13 }
 0x17f   :  { %664 = vrot.lane.b32.xlu1 %v661_v16, %s1206_s10  ;;  %v376_v16 = vsel %vm374_vm7, %v1443_v43, %v1488_v26 }
 0x181   :  { %685 = vrot.lane.b32.xlu0 %v681_v17, %s1213_s0  ;;  %v396_v17 = vsel %vm395_vm6, %v390_v31, %v392_v34  ;;  %v616_v34 = vrot.slane %v977_v3, 2 }
 0x183   :  { %676 = vrot.lane.b32.xlu1 %v993_v6, %s1208_s13 }
 0x185   :  { %870 = vperm.xlu0 %1069, %v866_v35  }
 0x187   :  { %683 = vrot.lane.b32.xlu1 %v680_v18, %s1213_s0  ;;  %v384_v18 = vsel %vm383_vm2, %v378_v38, %v380_v29 }
 0x188   :  { %v470_v43 = vsel %vm190_vm1, %v384_v18, %v396_v17 }
 0x18b   :  { %687 = vrot.lane.b32.xlu1 %v682_v19, %s1213_s0 }
 0x18f   :  { %875 = vperm.xlu1 %1070, %v867_v36  }
 0x1bf   :  { %v353_v50 = vpop.permute.xlu0 %352 }
 0x1c1   :  { %v448_v51 = vpop.permute.xlu1 %447 }
 0x1c3   :  { %v411_v53 = vpop.permute.xlu0 %410 }
 0x1c5   :  { %v623_v54 = vpop.permute.xlu1 %622 }
 0x1c7   :  { %v446_v55 = vpop.permute.xlu0 %445 }
 0x1c8   :  { %v451_v36 = vsel %vm449_vm11, %v446_v55, %v448_v51 }
 0x1c9   :  { %v351_v56 = vpop.permute.xlu1 %350 }
 0x1ca   :  { %v356_v33 = vsel %vm354_vm15, %v351_v56, %v353_v50 }
 0x1cb   :  { %v621_v57 = vpop.permute.xlu0 %620 }
 0x1cc   :  { %v625_v28 = vsel %vm337_vm8, %v621_v57, %v623_v54 }
 0x1cd   :  { %v349_v58 = vpop.permute.xlu1 %348  ;;  %v696_v38 = vsel %vm190_vm1, %v617_v25, %v625_v28 }
 0x1ce   :  { %v355_v4 = vsel %vm354_vm15, %v349_v58, %v351_v56 }
 0x1cf   :  { %v619_v59 = vpop.permute.xlu0 %618 }
 0x1d0   :  { %v624_v50 = vsel %vm337_vm8, %v619_v59, %v621_v57 }
 0x1d1   :  { %v409_v60 = vpop.permute.xlu1 %408 }
 0x1d2   :  { %v414_v13 = vsel %vm412_vm9, %v409_v60, %v411_v53 }
 0x1d3   :  { %v634_v61 = vpop.permute.xlu0 %633 }
 0x1d5   :  { %v407_v62 = vpop.permute.xlu1 %406 }
 0x1d6   :  { %v413_v21 = vsel %vm412_vm9, %v407_v62, %v409_v60  ;;  %v644_v60 = vsel %vm374_vm7, %v1496_v37, %v1500_v42 }
 0x1d7   :  { %v334_v0 = vpop.permute.xlu0 %333  ;;  %v475_v29 = vsel %vm194_vm3, %v470_v43, %v413_v21 }
 0x1d9   :  { %v444_v2 = vpop.permute.xlu1 %443 }
 0x1da   :  { %v450_v53 = vsel %vm449_vm11, %v444_v2, %v446_v55  ;;  %v643_v55 = vsel %vm374_vm7, %v1498_v41, %v1496_v37  ;;  %v659_v37 = vsel %vm395_vm6, %v1510_v48, %v1508_v47  ;;  %v651_v41 = vsel %vm383_vm2, %v1512_v49, %v1504_v45 }
 0x1db   :  { %v332_v5 = vpop.permute.xlu0 %331  ;;  %v488_v62 = vsel %vm190_vm1, %v450_v53, 0 }
 0x1dc   :  { %v338_v6 = vsel %vm337_vm8, %v332_v5, %v334_v0  ;;  %v660_v5 = vsel %vm395_vm6, %v1508_v47, %v1506_v46 }
 0x1dd   :  { %v454_v32 = vsel %vm190_vm1, %v977_v3, %v338_v6  ;;  %v336_v8 = vpop.permute.xlu1 %335 }
 0x1de   :  { %v339_v10 = vsel %vm337_vm8, %v334_v0, %v336_v8  ;;  %v459_v12 = vsel %vm194_vm3, %v454_v32, %v355_v4  ;;  %v652_v4 = vsel %vm383_vm2, %v1504_v45, %v1502_v44 }
 0x1df   :  { %v457_v39 = vsel %vm190_vm1, %v978_v7, %v339_v10  ;;  %v429_v14 = vpop.permute.xlu0 %428  ;;  %v463_v15 = vsel %vm197_vm4, %v459_v12, %v1453_v52  ;;  %v477_v52 = vsel %vm194_vm3, %v473_v20, %v414_v13  ;;  %v712_v32 = vsel %vm190_vm1, %v652_v4, %v660_v5 }
 0x1e0   :  { %v461_v19 = vsel %vm194_vm3, %v457_v39, %v356_v33  ;;  %v709_v33 = vsel %vm190_vm1, %v651_v41, %v659_v37 }
 0x1e1   :  { %v431_v22 = vpop.permute.xlu1 %430  ;;  %v466_v23 = vsel %vm197_vm4, %v461_v19, %v376_v16 }
 0x1e2   :  { %v434_v24 = vsel %vm432_vm10, %v429_v14, %v431_v22  ;;  %493 = vmatprep.subr.bf16.mxu1 %v466_v23 }
 0x1e3   :  { %v427_v26 = vpop.permute.xlu0 %426  ;;  %494 = vmatpush1.bf16.msra.mxu1 %v463_v15  ;;  %v482_v27 = vsel %vm197_vm4, %v477_v52, %v434_v24 }
 0x1e4   :  { %v433_v11 = vsel %vm432_vm10, %v427_v26, %v429_v14  ;;  %495 = vmatprep.subr.bf16.mxu1 %v482_v27 }
 0x1e5   :  { %v632_v30 = vpop.permute.xlu1 %631  ;;  %v479_v31 = vsel %vm197_vm4, %v475_v29, %v433_v11 }
 0x1e6   :  { %v636_v35 = vsel %vm354_vm15, %v632_v30, %v634_v61  ;;  %v693_v61 = vsel %vm190_vm1, %v616_v34, %v624_v50 }
 0x1e7   :  { %496 = vmatpush1.bf16.msra.mxu1 %v479_v31  ;;  %v669_v54 = vpop.permute.xlu0 %668  ;;  %v700_v56 = vsel %vm194_vm3, %v696_v38, %v636_v35 }
 0x1e8   :  { %997 = vmatprep.subr.msk.bf16.mxu1 %vm190_vm1, %v451_v36  ;;  %v705_v59 = vsel %vm197_vm4, %v700_v56, %v644_v60 }
 0x1e9   :  { %v630_v58 = vpop.permute.xlu1 %629 }
 0x1ea   :  { %v635_v51 = vsel %vm354_vm15, %v630_v58, %v632_v30 }
 0x1eb   :  { %v698_v57 = vsel %vm194_vm3, %v693_v61, %v635_v51  ;;  %498 = vmatpush1.bf16.msra.mxu1 %v488_v62  ;;  %v675_v2 = vpop.permute.xlu0 %674 }
 0x1ec   :  { %729 = vmatprep.subr.bf16.mxu1 %v705_v59  ;;  %v702_v0 = vsel %vm197_vm4, %v698_v57, %v643_v55 }
 0x1ed   :  { %v667_v42 = vpop.permute.xlu1 %666 }
 0x1ee   :  { %998 = vmatmul.mubr.msk.bf16.vlgmr.msra.gmra.mrb[0].mxu1 %vm209_vm0, %v256_v63  ;;  %v671_v7 = vsel %vm412_vm9, %v667_v42, %v669_v54 }
 0x1ef   :  { %730 = vmatpush1.bf16.msra.mxu1 %v702_v0  ;;  %761 = vmatprep.mubr.bf16.mxu1 %v1194_v1  ;;  %v673_v48 = vpop.permute.xlu0 %672  ;;  %v716_v44 = vsel %vm194_vm3, %v712_v32, %v671_v7  ;;  %v890_v0 = vstv %s1631_s8 }
 0x1f0   :  { %v678_v45 = vsel %vm432_vm10, %v673_v48, %v675_v2 }
 0x1f1   :  { %v665_v3 = vpop.permute.xlu1 %664 }
 0x1f2   :  { %v670_v6 = vsel %vm412_vm9, %v665_v3, %v667_v42 }
 0x1f3   :  { %v714_v49 = vsel %vm194_vm3, %v709_v33, %v670_v6  ;;  %v686_v10 = vpop.permute.xlu0 %685 }
 0x1f4   :  { %v718_v47 = vsel %vm197_vm4, %v714_v49, %v678_v45  ;;  %v948_v49 = vld [vmem:[%s1625_s2] sm:$0xff] }
 0x1f5   :  { %v677_v8 = vpop.permute.xlu1 %676 }
 0x1f6   :  { %v679_v40 = vsel %vm432_vm10, %v675_v2, %v677_v8  ;;  %v949_v8 = vld [vmem:[%s1625_s2 + $0x8] sm:$0xff] }
 0x1f7   :  { %v721_v46 = vsel %vm197_vm4, %v716_v44, %v679_v40 }
 0x1f8   :  { %731 = vmatprep.subr.bf16.mxu1 %v721_v46 }
 0x1f9   :  { %732 = vmatpush1.bf16.msra.mxu1 %v718_v47  ;;  %v684_v9 = vpop.permute.xlu1 %683 }
 0x1fa   :  { %v689_v12 = vsel %vm449_vm11, %v684_v9, %v686_v10 }
 0x1fb   :  { %v724_v14 = vsel %vm190_vm1, %v689_v12, 0 }
 0x1fd   :  { %v688_v13 = vpop.permute.xlu1 %687 }
 0x1fe   :  { %v690_v39 = vsel %vm449_vm11, %v686_v10, %v688_v13 }
 0x1ff   :  { %1001 = vmatprep.subr.msk.bf16.mxu1 %vm190_vm1, %v690_v39 }
 0x200   :  { %734 = vmatpush1.bf16.msra.mxu1 %v724_v14 }
 0x203   :  { %1002 = vmatmul.mubr.msk.bf16.vlgmr.msra.gmra.mrb[4].mxu1 %vm209_vm0, %v256_v63  ;;  %v886_v63 = vld [vmem:[%s1630_s7] sm:$0xf] }
 0x204   :  { %927 = vmatprep.mubr.bf16.mxu1 %v1194_v1  ;;  %v871_v29 = vpop.permute.xlu0 %870 }
 0x20c   :  { %v250_v15 = vpop.f32.mrb[0].mxu0 }
 0x20d   :  { %v1031_v16 = vpop.f32.mrb[1].mxu0 }
 0x20e   :  { %v253_v17 = vpop.f32.mrb[2].mxu0  ;;  %v876_v36 = vpop.permute.xlu1 %875 }
 0x20f   :  { %v1032_v18 = vpop.f32.mrb[3].mxu0 }
 0x21b   :  { %v610_v19 = vpop.f32.mrb[4].mxu0 }
 0x21c   :  { %v770_v20 = vpack.c.bf16 %v610_v19, %v250_v15  ;;  %v1041_v21 = vpop.f32.mrb[5].mxu0 }
 0x21d   :  { %v613_v22 = vpop.f32.mrb[6].mxu0 }
 0x21e   :  { %v1042_v23 = vpop.f32.mrb[7].mxu0  ;;  %1011 = vmatmul.mubr.msk.bf16.vlgmr.msra.gmra.mrb[8].mxu0 %vm819_vm12, %v770_v20 }
 0x2c1   :  { %v527_v24 = vpop.f32.mrb[0].mxu1 }
 0x2c2   :  { %v529_v52 = vpop.f32.mrb[1].mxu1 }
 0x2c3   :  { %v531_v25 = vpop.f32.mrb[2].mxu1 }
 0x2c4   :  { %v532_v43 = vpop.f32.mrb[3].mxu1 }
 0x2d6   :  { %v763_v26 = vpop.f32.mrb[4].mxu1 }
 0x2d7   :  { %v765_v27 = vpop.f32.mrb[5].mxu1 }
 0x2d8   :  { %v767_v28 = vpop.f32.mrb[6].mxu1 }
 0x2d9   :  { %v768_v11 = vpop.f32.mrb[7].mxu1 }
 0x2f1   :  { %v857_v1 = vpop.f32.mrb[8].mxu0 }
 0x2f2   :  { %v858_v30 = vadd.f32 %v857_v1, %v527_v24  ;;  %v859_v31 = vpop.f32.mrb[9].mxu0 }
 0x2f3   :  { %v860_v34 = vadd.f32 %v859_v31, %v529_v52  ;;  %v861_v35 = vpop.f32.mrb[10].mxu0 }
 0x2f4   :  { %v878_v38 = vadd.f32 %v871_v29, %v858_v30  ;;  %v862_v50 = vadd.f32 %v861_v35, %v763_v26  ;;  %v863_v53 = vpop.f32.mrb[11].mxu0 }
 0x2f5   :  { %v879_v54 = vadd.f32 %v871_v29, %v860_v34  ;;  %v864_v56 = vadd.f32 %v863_v53, %v765_v27 }
 0x2f6   :  { %v880_v58 = vadd.f32 %v876_v36, %v862_v50  ;;  %v882_v61 = vmax.f32 %v878_v38, 0.0 }
 0x2f7   :  { %v881_v60 = vadd.f32 %v876_v36, %v864_v56  ;;  %v883_v62 = vmax.f32 %v879_v54, 0.0 }
 0x2f8   :  { %v884_v51 = vmax.f32 %v880_v58, 0.0 }
 0x2f9   :  { %v885_v55 = vmax.f32 %v881_v60, 0.0 }
 0x2fa   :  { %v887_v57 = vpack.c.bf16 %v884_v51, %v882_v61 }
 0x2fb   :  { %v888_v59 = vpack.c.bf16 %v885_v55, %v883_v62 }
 0x2fd   :  { %895 = vmatprep.subr.bf16.mxu1 %v888_v59 }
 0x2fe   :  { %896 = vmatpush1.bf16.msra.mxu1 %v887_v57 }
 0x301   :  { %1012 = vmatmul.mubr.msk.bf16.vlgmr.msra.gmra.mrb[8].mxu1 %vm267_vm5, %v886_v63 }
 0x3d4   :  { %v929_v42 = vpop.f32.mrb[8].mxu1 }
 0x3d5   :  { %v930_v2 = vadd.f32 %v929_v42, %v890_v0  ;;  %v931_v37 = vpop.f32.mrb[9].mxu1 }
 0x3d6   :  { %v932_v41 = vadd.f32 %v931_v37, %v890_v0  ;;  %v933_v3 = vpop.f32.mrb[10].mxu1 }
 0x3d7   :  { %v1013_v4 = vmul.f32 -1.442695, %v930_v2  ;;  %v934_v5 = vpop.f32.mrb[11].mxu1 }
 0x3d8   :  { %v1014_v6 = vmul.f32 -1.442695, %v932_v41 }
 0x3d9   :  { %1087 = vpow2.f32 %v1013_v4 }
 0x3da   :  { %1089 = vpow2.f32 %v1014_v6 }
 0x3e3   :  { %v1088_v7 = vpop.eup %1087 }
 0x3e4   :  { %v1090_v33 = vpop.eup %1089  ;;  %v942_v48 = vadd.f32 1.0, %v1088_v7 }
 0x3e5   :  { %v943_v32 = vadd.f32 1.0, %v1090_v33 }
 0x3e6   :  { %1091 = vrcp.f32 %v942_v48 }
 0x3e7   :  { %1093 = vrcp.f32 %v943_v32 }
 0x3f0   :  { %v1092_v40 = vpop.eup %1091 }
 0x3f1   :  { %v1094_v44 = vpop.eup %1093  ;;  %v950_v45 = vmul.f32 %v1092_v40, %v948_v49 }
 0x3f2   :  { %v951_v46 = vmul.f32 %v1094_v44, %v949_v8 }
 0x3f3   :  { %952 = vst [vmem:[#allocation9] sm:$0xff] %v950_v45 }
 0x3f4   :  { %953 = vst [vmem:[#allocation9 + $0x8] sm:$0xff] %v951_v46 }
 0x3f5   :  { %1172 = shalt.err (!%p1169_p0)
}
 0x3f6   :  { %s1173_s2 = scalar_lea.hbm %s1632_s9, 256 }
 0x3f7   :  { %p1174_p1 = scmp.ne.s32.totalorder %s1632_s9, %s1173_s2  ;;  %p1177_p2 = scmp.lt.u32.totalorder %s1173_s2, %s1632_s9 }
 0x3f9   :  { %p1179_p3 = pnand %p1177_p2, %p1174_p1 }
 0x3fb   :  { %1182 = shalt.err (!%p1179_p3)
}
 0x3fc   :  { %963 = dma.vmem_to_hbm [thread:$0]  %s961_s30, 256, %s1632_s9, [#allocation5]  }
 0x3fd   :  { %1187 = dma.done.wait [#allocation5], 256  }
 0x3fe   :  { %1188 = vsyncadd [#allocation5], 4294967040 }
 0x3ff   :  { %967 = vsyncpa [#allocation4], 1 }
 0x400   :  { %968 = vsyncpa [#allocation7], 1 }
 0x401   :  { %969 = vsyncpa [#allocation5], 1 }

</bundles_post_ra>
